<compile_context>
chip_gen: v7x
topology: tpu7x:2x2x1
jax: 0.10.0
libtpu: 0.0.40
codegen_flags: <defaults>
</compile_context>

<pallas_src>
import functools

import jax
import jax.numpy as jnp
from jax.experimental import pallas as pl
from jax.experimental.pallas import tpu as pltpu


def _round_up(x, m):
    return ((x + m - 1) // m) * m


_VMEM_LIMIT = 32 * 1024 * 1024  # far above actual usage; safe on v5e..v7x


def _convT_to_conv(w):
    # ConvTranspose2d weight (IC, OC, k, k), stride 1, pad p  ==
    # Conv2d weight (OC, IC, k, k) flipped, pad k-1-p.
    return jnp.flip(w, axis=(2, 3)).transpose(1, 0, 2, 3)


# ----------------------------------------------------------------------------
# Kernel 1: fused branch convs (1x1 / 3x3 / 5x5 -> [X|Y|Z]) with in-kernel tap
# streaming + bias + per-image BN partial stats.  Grid: one image per step.
# ----------------------------------------------------------------------------
def _branch_kernel(xp_ref, w_ref, b_ref, y_ref, sum_ref, ssq_ref,
                   *, H, W, C, n1_pad):
    HW = H * W
    acc = jnp.zeros((HW, n1_pad), jnp.float32)
    for t in range(25):
        ki, kj = t // 5, t % 5
        # shifted (H, W, C) window of the padded image, flattened to (HW, C)
        a = xp_ref[0, ki:ki + H, kj:kj + W, :].reshape(HW, C)
        acc = acc + jnp.dot(a.astype(jnp.bfloat16),
                            w_ref[t * C:(t + 1) * C, :],
                            preferred_element_type=jnp.float32)
    y = acc + b_ref[...]
    y_ref[...] = y.astype(y_ref.dtype)                      # bf16 intermediate
    # per-image partial BN stats (taken from the f32 accumulator)
    sum_ref[...] = jnp.sum(y, axis=0, keepdims=True)[None]
    ssq_ref[...] = jnp.sum(y * y, axis=0, keepdims=True)[None]


def branch_conv(xp, w_stack, bias_row, N, H, W, C, n1_pad):
    HW = H * W
    M = N * HW
    kernel = functools.partial(_branch_kernel, H=H, W=W, C=C, n1_pad=n1_pad)
    return pl.pallas_call(
        kernel,
        out_shape=(jax.ShapeDtypeStruct((M, n1_pad), jnp.bfloat16),
                   jax.ShapeDtypeStruct((N, 1, n1_pad), jnp.float32),
                   jax.ShapeDtypeStruct((N, 1, n1_pad), jnp.float32)),
        grid=(N,),
        in_specs=[pl.BlockSpec((1, H + 4, W + 4, C), lambda n: (n, 0, 0, 0)),
                  pl.BlockSpec((25 * C, n1_pad), lambda n: (0, 0)),   # resident
                  pl.BlockSpec((1, n1_pad), lambda n: (0, 0))],
        out_specs=(pl.BlockSpec((HW, n1_pad), lambda n: (n, 0)),
                   pl.BlockSpec((1, 1, n1_pad), lambda n: (n, 0, 0)),
                   pl.BlockSpec((1, 1, n1_pad), lambda n: (n, 0, 0))),
        compiler_params=pltpu.CompilerParams(
            dimension_semantics=("parallel",),
            vmem_limit_bytes=_VMEM_LIMIT),
    )(xp, w_stack, bias_row)


# ----------------------------------------------------------------------------
# Kernel 2: 1x1 'conv' over the concat.  Branch BN affine + ReLU fused into
# the prologue; bias + per-image BN partial stats in the epilogue.
# ----------------------------------------------------------------------------
def _mix_kernel(y1_ref, s_ref, t_ref, w_ref, b_ref, y2_ref, sum_ref, ssq_ref):
    a = jnp.maximum(y1_ref[...].astype(jnp.float32) * s_ref[...] + t_ref[...], 0.0)
    y = jnp.dot(a.astype(jnp.bfloat16), w_ref[...],
                preferred_element_type=jnp.float32) + b_ref[...]
    y2_ref[...] = y
    sum_ref[...] = jnp.sum(y, axis=0, keepdims=True)[None]
    ssq_ref[...] = jnp.sum(y * y, axis=0, keepdims=True)[None]


def mix_conv(y1, scale1, shift1, wc, bias_row, N, HW, n1_pad, n2_pad):
    M = N * HW
    return pl.pallas_call(
        _mix_kernel,
        out_shape=(jax.ShapeDtypeStruct((M, n2_pad), jnp.float32),
                   jax.ShapeDtypeStruct((N, 1, n2_pad), jnp.float32),
                   jax.ShapeDtypeStruct((N, 1, n2_pad), jnp.float32)),
        grid=(N,),
        in_specs=[pl.BlockSpec((HW, n1_pad), lambda n: (n, 0)),
                  pl.BlockSpec((1, n1_pad), lambda n: (0, 0)),
                  pl.BlockSpec((1, n1_pad), lambda n: (0, 0)),
                  pl.BlockSpec((n1_pad, n2_pad), lambda n: (0, 0)),  # resident
                  pl.BlockSpec((1, n2_pad), lambda n: (0, 0))],
        out_specs=(pl.BlockSpec((HW, n2_pad), lambda n: (n, 0)),
                   pl.BlockSpec((1, 1, n2_pad), lambda n: (n, 0, 0)),
                   pl.BlockSpec((1, 1, n2_pad), lambda n: (n, 0, 0))),
        compiler_params=pltpu.CompilerParams(
            dimension_semantics=("parallel",),
            vmem_limit_bytes=_VMEM_LIMIT),
    )(y1, scale1.reshape(1, n1_pad), shift1.reshape(1, n1_pad), wc, bias_row)


# ----------------------------------------------------------------------------
# Kernel 3: SE gate only (squeeze -> 1x1 -> ReLU -> 1x1 -> sigmoid), per image.
# ----------------------------------------------------------------------------
def _gate_kernel(x_ref, w1_ref, b1_ref, w2_ref, b2_ref, g_ref):
    s = jnp.mean(x_ref[...], axis=0, keepdims=True)                  # (1, C)
    h = jnp.maximum(jnp.dot(s, w1_ref[...],
                            preferred_element_type=jnp.float32) + b1_ref[...], 0.0)
    e = jnp.dot(h, w2_ref[...], preferred_element_type=jnp.float32) + b2_ref[...]
    g_ref[...] = jax.nn.sigmoid(e)[None]


def se_gate(x2d, w1p, b1p, w2p, b2p, N, HW, C, c4_pad, n2_pad):
    return pl.pallas_call(
        _gate_kernel,
        out_shape=jax.ShapeDtypeStruct((N, 1, n2_pad), jnp.float32),
        grid=(N,),
        in_specs=[pl.BlockSpec((HW, C), lambda n: (n, 0)),
                  pl.BlockSpec((C, c4_pad), lambda n: (0, 0)),
                  pl.BlockSpec((1, c4_pad), lambda n: (0, 0)),
                  pl.BlockSpec((c4_pad, n2_pad), lambda n: (0, 0)),
                  pl.BlockSpec((1, n2_pad), lambda n: (0, 0))],
        out_specs=pl.BlockSpec((1, 1, n2_pad), lambda n: (n, 0, 0)),
        compiler_params=pltpu.CompilerParams(
            dimension_semantics=("parallel",),
            vmem_limit_bytes=_VMEM_LIMIT),
    )(x2d, w1p, b1p, w2p, b2p)


# ----------------------------------------------------------------------------
# Kernel 4: final BN affine + ReLU + fused SE residual (x * gate).
# ----------------------------------------------------------------------------
def _out_kernel(y2_ref, s_ref, t_ref, x_ref, g_ref, o_ref):
    o_ref[...] = (jnp.maximum(y2_ref[...] * s_ref[...] + t_ref[...], 0.0)
                  + x_ref[...] * g_ref[0])


def bn_relu_se_add(y2, scale2, shift2, x_pad, gate, N, HW, n2_pad):
    M = N * HW
    return pl.pallas_call(
        _out_kernel,
        out_shape=jax.ShapeDtypeStruct((M, n2_pad), jnp.float32),
        grid=(N,),
        in_specs=[pl.BlockSpec((HW, n2_pad), lambda n: (n, 0)),
                  pl.BlockSpec((1, n2_pad), lambda n: (0, 0)),
                  pl.BlockSpec((1, n2_pad), lambda n: (0, 0)),
                  pl.BlockSpec((HW, n2_pad), lambda n: (n, 0)),
                  pl.BlockSpec((1, 1, n2_pad), lambda n: (n, 0, 0))],
        out_specs=pl.BlockSpec((HW, n2_pad), lambda n: (n, 0)),
        compiler_params=pltpu.CompilerParams(
            dimension_semantics=("parallel",),
            vmem_limit_bytes=_VMEM_LIMIT),
    )(y2, scale2.reshape(1, n2_pad), shift2.reshape(1, n2_pad), x_pad, gate)


def bn_affine_from_stats(psum, pssq, gamma, beta, m_count, eps=1e-5):
    col_sum = jnp.sum(psum, axis=(0, 1))
    col_ssq = jnp.sum(pssq, axis=(0, 1))
    mean = col_sum / m_count
    var = jnp.maximum(col_ssq / m_count - mean * mean, 0.0)   # biased, as torch BN
    scale = gamma / jnp.sqrt(var + eps)
    shift = beta - mean * scale
    return scale, shift


# ----------------------------------------------------------------------------
# inception.forward
# ----------------------------------------------------------------------------
def inception_forward(p, x_nchw):
    N, C, H, W = x_nchw.shape
    HW = H * W
    M = N * HW
    assert HW % 8 == 0, "H*W must be a multiple of 8 for TPU tiling"
    C3 = 3 * C
    N1_pad = _round_up(C3, 128)
    N2_pad = _round_up(C, 128)
    C4 = p["se_b1"].shape[0]
    C4_pad = _round_up(C4, 128)

    x = jnp.transpose(x_nchw, (0, 2, 3, 1)).astype(jnp.float32)      # NHWC
    x2d = x.reshape(M, C)
    xp = jnp.pad(x, ((0, 0), (2, 2), (2, 2), (0, 0)))                # halo only

    # per-tap combined weight stack (25*C, N1_pad): rows tap-major, ic minor;
    # columns = [1x1 | 3x3 | 5x5] output channels (zero where the tap is
    # outside a branch's footprint).
    w1c = _convT_to_conv(p["w1"])
    w3c = _convT_to_conv(p["w3"])
    w5c = _convT_to_conv(p["w5"])
    zero_cc = jnp.zeros((C, C), jnp.float32)
    blocks = []
    for ki in range(5):
        for kj in range(5):
            b1 = w1c[:, :, 0, 0].T if (ki == 2 and kj == 2) else zero_cc
            b3 = (w3c[:, :, ki - 1, kj - 1].T
                  if (1 <= ki <= 3 and 1 <= kj <= 3) else zero_cc)
            b5 = w5c[:, :, ki, kj].T
            blocks.append(jnp.concatenate([b1, b3, b5], axis=1))     # (C, 3C)
    w_stack = jnp.concatenate(blocks, axis=0)                        # (25C, 3C)
    w_stack = jnp.pad(w_stack, ((0, 0), (0, N1_pad - C3))).astype(jnp.bfloat16)

    bias1 = jnp.pad(jnp.concatenate([p["b1"], p["b3"], p["b5"]]), (0, N1_pad - C3))
    g1 = jnp.pad(jnp.concatenate([p["g1"], p["g3"], p["g5"]]), (0, N1_pad - C3))
    be1 = jnp.pad(jnp.concatenate([p["be1"], p["be3"], p["be5"]]), (0, N1_pad - C3))

    # branch convs (+ fused partial BN stats) -> pre-BN [X|Y|Z], bf16
    y1, s1, ss1 = branch_conv(xp, w_stack,
                              bias1.reshape(1, N1_pad).astype(jnp.float32),
                              N, H, W, C, N1_pad)
    scale1, shift1 = bn_affine_from_stats(s1, ss1, g1, be1, M)

    # 1x1 'conv' over the concat; branch BN+ReLU fused into its prologue
    wc = jnp.pad(p["wc"].reshape(C3, C),
                 ((0, N1_pad - C3), (0, N2_pad - C))).astype(jnp.bfloat16)
    biasc = jnp.pad(p["bc"], (0, N2_pad - C)).reshape(1, N2_pad).astype(jnp.float32)
    gc = jnp.pad(p["gc"], (0, N2_pad - C))
    bec = jnp.pad(p["bec"], (0, N2_pad - C))
    y2, s2, ss2 = mix_conv(y1, scale1, shift1, wc, biasc, N, HW, N1_pad, N2_pad)
    scale2, shift2 = bn_affine_from_stats(s2, ss2, gc, bec, M)

    # SE gate only (the x * gate scaling is fused into the final kernel)
    w1p = jnp.pad(p["se_w1"].reshape(C4, C).T,
                  ((0, 0), (0, C4_pad - C4))).astype(jnp.float32)
    b1p = jnp.pad(p["se_b1"], (0, C4_pad - C4)).reshape(1, C4_pad).astype(jnp.float32)
    w2p = jnp.pad(p["se_w2"].reshape(C, C4).T,
                  ((0, C4_pad - C4), (0, N2_pad - C))).astype(jnp.float32)
    b2p = jnp.pad(p["se_b2"], (0, N2_pad - C)).reshape(1, N2_pad).astype(jnp.float32)
    gate = se_gate(x2d, w1p, b1p, w2p, b2p, N, HW, C, C4_pad, N2_pad)

    # final BN + ReLU + SE residual, back to NCHW
    x_pad = jnp.pad(x2d, ((0, 0), (0, N2_pad - C)))
    out = bn_relu_se_add(y2, scale2, shift2, x_pad, gate, N, HW, N2_pad)
    out = out[:, :C].reshape(N, H, W, C).transpose(0, 3, 1, 2)
    return out


# ----------------------------------------------------------------------------
# Pure-JAX reference (training-mode BN, f32) for correctness checking
# ----------------------------------------------------------------------------
def _ref_forward(p, x):
    eps = 1e-5

    def convT_same(x, w, b, pad):
        wc = jnp.flip(w, axis=(2, 3)).transpose(1, 0, 2, 3)
        y = jax.lax.conv_general_dilated(
            x, wc, window_strides=(1, 1), padding=[(pad, pad), (pad, pad)],
            dimension_numbers=("NCHW", "OIHW", "NCHW"),
            precision=jax.lax.Precision.HIGHEST)
        return y + b[None, :, None, None]

    def bn_relu(y, g, be):
        mean = jnp.mean(y, axis=(0, 2, 3), keepdims=True)
        var = jnp.var(y, axis=(0, 2, 3), keepdims=True)
        yn = (y - mean) / jnp.sqrt(var + eps)
        return jnp.maximum(yn * g[None, :, None, None] + be[None, :, None, None], 0.0)

    X = bn_relu(convT_same(x, p["w1"], p["b1"], 0), p["g1"], p["be1"])
    Y = bn_relu(convT_same(x, p["w3"], p["b3"], 1), p["g3"], p["be3"])
    Z = bn_relu(convT_same(x, p["w5"], p["b5"], 2), p["g5"], p["be5"])
    D = jnp.concatenate([X, Y, Z], axis=1)
    E = bn_relu(convT_same(D, p["wc"], p["bc"], 0), p["gc"], p["bec"])

    C = x.shape[1]
    C4 = p["se_b1"].shape[0]
    s = jnp.mean(x, axis=(2, 3))
    h = jnp.maximum(s @ p["se_w1"].reshape(C4, C).T + p["se_b1"], 0.0)
    gate = jax.nn.sigmoid(h @ p["se_w2"].reshape(C, C4).T + p["se_b2"])
    return E + x * gate[:, :, None, None]


# ----------------------------------------------------------------------------
# Parameters (mirrors PyTorch inception(num_channels=C) layout)
# ----------------------------------------------------------------------------
def init_params(C, key):
    ks = iter(jax.random.split(key, 32))

    def Wt(*s):
        return jax.random.normal(next(ks), s, jnp.float32) * 0.05

    def Bv(n):
        return jax.random.normal(next(ks), (n,), jnp.float32) * 0.02

    def G(n):
        return 1.0 + 0.1 * jax.random.normal(next(ks), (n,), jnp.float32)

    def Be(n):
        return 0.1 * jax.random.normal(next(ks), (n,), jnp.float32)

    C4 = C // 4
    return {
        # ConvTranspose2d weights are (in, out, k, k) as in PyTorch
        "w1": Wt(C, C, 1, 1), "b1": Bv(C), "g1": G(C), "be1": Be(C),
        "w3": Wt(C, C, 3, 3), "b3": Bv(C), "g3": G(C), "be3": Be(C),
        "w5": Wt(C, C, 5, 5), "b5": Bv(C), "g5": G(C), "be5": Be(C),
        "wc": Wt(3 * C, C, 1, 1), "bc": Bv(C), "gc": G(C), "bec": Be(C),
        # SE: Conv2d weights are (out, in, 1, 1)
        "se_w1": Wt(C4, C, 1, 1), "se_b1": Bv(C4),
        "se_w2": Wt(C, C4, 1, 1), "se_b2": Bv(C),
    }


if __name__ == "__main__":
    C, N, H, W = 32, 2, 8, 8          # small, architecture-consistent sizes
    key = jax.random.PRNGKey(0)
    pkey, xkey = jax.random.split(key)
    params = init_params(C, pkey)
    x = jax.random.normal(xkey, (N, C, H, W), jnp.float32)

    fwd = jax.jit(inception_forward)
    out = jax.block_until_ready(fwd(params, x))

    assert out.shape == (N, C, H, W), out.shape
    assert bool(jnp.all(jnp.isfinite(out)))

    ref = jax.jit(_ref_forward)(params, x)
    rel = float(jnp.linalg.norm(out - ref) / (jnp.linalg.norm(ref) + 1e-6))
    assert rel < 5e-2, f"relative error too large: {rel}"

    print("KERNEL_OK")
</pallas_src>

<mosaic_0001>
module attributes {stable_mosaic.version = 11 : i64} {
  func.func @_branch_kernel(%arg0: i32, %arg1: memref<1x12x12x32xf32, #tpu.memory_space<vmem>>, %arg2: memref<800x128xbf16, #tpu.memory_space<vmem>>, %arg3: memref<1x128xf32, #tpu.memory_space<vmem>>, %arg4: memref<64x128xbf16, #tpu.memory_space<vmem>>, %arg5: memref<1x1x128xf32, #tpu.memory_space<vmem>>, %arg6: memref<1x1x128xf32, #tpu.memory_space<vmem>>) attributes {dimension_semantics = [#tpu.dimension_semantics<parallel>], iteration_bounds = array<i64: 2>, scalar_prefetch = 0 : i64, scratch_operands = 0 : i64, tpu.core_type = #tpu.core_type<tc>, window_params = [{transform_indices = @transform_0, window_bounds = array<i64: 1, 12, 12, 32>}, {pipeline_mode = #tpu.pipeline_mode<synchronous>, transform_indices = @transform_1, window_bounds = array<i64: 800, 128>}, {pipeline_mode = #tpu.pipeline_mode<synchronous>, transform_indices = @transform_2, window_bounds = array<i64: 1, 128>}, {transform_indices = @transform_3, window_bounds = array<i64: 64, 128>}, {transform_indices = @transform_4, window_bounds = array<i64: 1, 1, 128>}, {transform_indices = @transform_5, window_bounds = array<i64: 1, 1, 128>}]} {
    %cst = arith.constant 0.000000e+00 : f32
    %0 = vector.broadcast %cst : f32 to vector<64x128xf32>
    %c0 = arith.constant 0 : index
    %c0_0 = arith.constant 0 : index
    %c0_1 = arith.constant 0 : index
    %c0_2 = arith.constant 0 : index
    %1 = vector.load %arg1[%c0, %c0_0, %c0_1, %c0_2] : memref<1x12x12x32xf32, #tpu.memory_space<vmem>>, vector<1x8x8x32xf32>
    %2 = vector.shape_cast %1 : vector<1x8x8x32xf32> to vector<8x8x32xf32>
    %3 = vector.shape_cast %2 : vector<8x8x32xf32> to vector<64x32xf32>
    %4 = arith.truncf %3 : vector<64x32xf32> to vector<64x32xbf16>
    %c0_3 = arith.constant 0 : index
    %c0_4 = arith.constant 0 : index
    %5 = vector.load %arg2[%c0_3, %c0_4] : memref<800x128xbf16, #tpu.memory_space<vmem>>, vector<32x128xbf16>
    %cst_5 = arith.constant dense<0.000000e+00> : vector<64x128xf32>
    %6 = tpu.matmul %4, %5, %cst_5 {dimension_numbers = #tpu.dot_dimension_numbers<[1], [0], [0], [1], [0, 0, 1, 1], [], []>} : vector<64x32xbf16>, vector<32x128xbf16>, vector<64x128xf32> -> vector<64x128xf32>
    %7 = arith.addf %0, %6 : vector<64x128xf32>
    %c0_6 = arith.constant 0 : index
    %c0_7 = arith.constant 0 : index
    %c1 = arith.constant 1 : index
    %c0_8 = arith.constant 0 : index
    %8 = vector.load %arg1[%c0_6, %c0_7, %c1, %c0_8] : memref<1x12x12x32xf32, #tpu.memory_space<vmem>>, vector<1x8x8x32xf32>
    %9 = vector.shape_cast %8 : vector<1x8x8x32xf32> to vector<8x8x32xf32>
    %10 = vector.shape_cast %9 : vector<8x8x32xf32> to vector<64x32xf32>
    %11 = arith.truncf %10 : vector<64x32xf32> to vector<64x32xbf16>
    %c32 = arith.constant 32 : index
    %c0_9 = arith.constant 0 : index
    %12 = vector.load %arg2[%c32, %c0_9] : memref<800x128xbf16, #tpu.memory_space<vmem>>, vector<32x128xbf16>
    %cst_10 = arith.constant dense<0.000000e+00> : vector<64x128xf32>
    %13 = tpu.matmul %11, %12, %cst_10 {dimension_numbers = #tpu.dot_dimension_numbers<[1], [0], [0], [1], [0, 0, 1, 1], [], []>} : vector<64x32xbf16>, vector<32x128xbf16>, vector<64x128xf32> -> vector<64x128xf32>
    %14 = arith.addf %7, %13 : vector<64x128xf32>
    %c0_11 = arith.constant 0 : index
    %c0_12 = arith.constant 0 : index
    %c2 = arith.constant 2 : index
    %c0_13 = arith.constant 0 : index
    %15 = vector.load %arg1[%c0_11, %c0_12, %c2, %c0_13] : memref<1x12x12x32xf32, #tpu.memory_space<vmem>>, vector<1x8x8x32xf32>
    %16 = vector.shape_cast %15 : vector<1x8x8x32xf32> to vector<8x8x32xf32>
    %17 = vector.shape_cast %16 : vector<8x8x32xf32> to vector<64x32xf32>
    %18 = arith.truncf %17 : vector<64x32xf32> to vector<64x32xbf16>
    %c64 = arith.constant 64 : index
    %c0_14 = arith.constant 0 : index
    %19 = vector.load %arg2[%c64, %c0_14] : memref<800x128xbf16, #tpu.memory_space<vmem>>, vector<32x128xbf16>
    %cst_15 = arith.constant dense<0.000000e+00> : vector<64x128xf32>
    %20 = tpu.matmul %18, %19, %cst_15 {dimension_numbers = #tpu.dot_dimension_numbers<[1], [0], [0], [1], [0, 0, 1, 1], [], []>} : vector<64x32xbf16>, vector<32x128xbf16>, vector<64x128xf32> -> vector<64x128xf32>
    %21 = arith.addf %14, %20 : vector<64x128xf32>
    %c0_16 = arith.constant 0 : index
    %c0_17 = arith.constant 0 : index
    %c3 = arith.constant 3 : index
    %c0_18 = arith.constant 0 : index
    %22 = vector.load %arg1[%c0_16, %c0_17, %c3, %c0_18] : memref<1x12x12x32xf32, #tpu.memory_space<vmem>>, vector<1x8x8x32xf32>
    %23 = vector.shape_cast %22 : vector<1x8x8x32xf32> to vector<8x8x32xf32>
    %24 = vector.shape_cast %23 : vector<8x8x32xf32> to vector<64x32xf32>
    %25 = arith.truncf %24 : vector<64x32xf32> to vector<64x32xbf16>
    %c96 = arith.constant 96 : index
    %c0_19 = arith.constant 0 : index
    %26 = vector.load %arg2[%c96, %c0_19] : memref<800x128xbf16, #tpu.memory_space<vmem>>, vector<32x128xbf16>
    %cst_20 = arith.constant dense<0.000000e+00> : vector<64x128xf32>
    %27 = tpu.matmul %25, %26, %cst_20 {dimension_numbers = #tpu.dot_dimension_numbers<[1], [0], [0], [1], [0, 0, 1, 1], [], []>} : vector<64x32xbf16>, vector<32x128xbf16>, vector<64x128xf32> -> vector<64x128xf32>
    %28 = arith.addf %21, %27 : vector<64x128xf32>
    %c0_21 = arith.constant 0 : index
    %c0_22 = arith.constant 0 : index
    %c4 = arith.constant 4 : index
    %c0_23 = arith.constant 0 : index
    %29 = vector.load %arg1[%c0_21, %c0_22, %c4, %c0_23] : memref<1x12x12x32xf32, #tpu.memory_space<vmem>>, vector<1x8x8x32xf32>
    %30 = vector.shape_cast %29 : vector<1x8x8x32xf32> to vector<8x8x32xf32>
    %31 = vector.shape_cast %30 : vector<8x8x32xf32> to vector<64x32xf32>
    %32 = arith.truncf %31 : vector<64x32xf32> to vector<64x32xbf16>
    %c128 = arith.constant 128 : index
    %c0_24 = arith.constant 0 : index
    %33 = vector.load %arg2[%c128, %c0_24] : memref<800x128xbf16, #tpu.memory_space<vmem>>, vector<32x128xbf16>
    %cst_25 = arith.constant dense<0.000000e+00> : vector<64x128xf32>
    %34 = tpu.matmul %32, %33, %cst_25 {dimension_numbers = #tpu.dot_dimension_numbers<[1], [0], [0], [1], [0, 0, 1, 1], [], []>} : vector<64x32xbf16>, vector<32x128xbf16>, vector<64x128xf32> -> vector<64x128xf32>
    %35 = arith.addf %28, %34 : vector<64x128xf32>
    %c0_26 = arith.constant 0 : index
    %c1_27 = arith.constant 1 : index
    %c0_28 = arith.constant 0 : index
    %c0_29 = arith.constant 0 : index
    %36 = vector.load %arg1[%c0_26, %c1_27, %c0_28, %c0_29] : memref<1x12x12x32xf32, #tpu.memory_space<vmem>>, vector<1x8x8x32xf32>
    %37 = vector.shape_cast %36 : vector<1x8x8x32xf32> to vector<8x8x32xf32>
    %38 = vector.shape_cast %37 : vector<8x8x32xf32> to vector<64x32xf32>
    %39 = arith.truncf %38 : vector<64x32xf32> to vector<64x32xbf16>
    %c160 = arith.constant 160 : index
    %c0_30 = arith.constant 0 : index
    %40 = vector.load %arg2[%c160, %c0_30] : memref<800x128xbf16, #tpu.memory_space<vmem>>, vector<32x128xbf16>
    %cst_31 = arith.constant dense<0.000000e+00> : vector<64x128xf32>
    %41 = tpu.matmul %39, %40, %cst_31 {dimension_numbers = #tpu.dot_dimension_numbers<[1], [0], [0], [1], [0, 0, 1, 1], [], []>} : vector<64x32xbf16>, vector<32x128xbf16>, vector<64x128xf32> -> vector<64x128xf32>
    %42 = arith.addf %35, %41 : vector<64x128xf32>
    %c0_32 = arith.constant 0 : index
    %c1_33 = arith.constant 1 : index
    %c1_34 = arith.constant 1 : index
    %c0_35 = arith.constant 0 : index
    %43 = vector.load %arg1[%c0_32, %c1_33, %c1_34, %c0_35] : memref<1x12x12x32xf32, #tpu.memory_space<vmem>>, vector<1x8x8x32xf32>
    %44 = vector.shape_cast %43 : vector<1x8x8x32xf32> to vector<8x8x32xf32>
    %45 = vector.shape_cast %44 : vector<8x8x32xf32> to vector<64x32xf32>
    %46 = arith.truncf %45 : vector<64x32xf32> to vector<64x32xbf16>
    %c192 = arith.constant 192 : index
    %c0_36 = arith.constant 0 : index
    %47 = vector.load %arg2[%c192, %c0_36] : memref<800x128xbf16, #tpu.memory_space<vmem>>, vector<32x128xbf16>
    %cst_37 = arith.constant dense<0.000000e+00> : vector<64x128xf32>
    %48 = tpu.matmul %46, %47, %cst_37 {dimension_numbers = #tpu.dot_dimension_numbers<[1], [0], [0], [1], [0, 0, 1, 1], [], []>} : vector<64x32xbf16>, vector<32x128xbf16>, vector<64x128xf32> -> vector<64x128xf32>
    %49 = arith.addf %42, %48 : vector<64x128xf32>
    %c0_38 = arith.constant 0 : index
    %c1_39 = arith.constant 1 : index
    %c2_40 = arith.constant 2 : index
    %c0_41 = arith.constant 0 : index
    %50 = vector.load %arg1[%c0_38, %c1_39, %c2_40, %c0_41] : memref<1x12x12x32xf32, #tpu.memory_space<vmem>>, vector<1x8x8x32xf32>
    %51 = vector.shape_cast %50 : vector<1x8x8x32xf32> to vector<8x8x32xf32>
    %52 = vector.shape_cast %51 : vector<8x8x32xf32> to vector<64x32xf32>
    %53 = arith.truncf %52 : vector<64x32xf32> to vector<64x32xbf16>
    %c224 = arith.constant 224 : index
    %c0_42 = arith.constant 0 : index
    %54 = vector.load %arg2[%c224, %c0_42] : memref<800x128xbf16, #tpu.memory_space<vmem>>, vector<32x128xbf16>
    %cst_43 = arith.constant dense<0.000000e+00> : vector<64x128xf32>
    %55 = tpu.matmul %53, %54, %cst_43 {dimension_numbers = #tpu.dot_dimension_numbers<[1], [0], [0], [1], [0, 0, 1, 1], [], []>} : vector<64x32xbf16>, vector<32x128xbf16>, vector<64x128xf32> -> vector<64x128xf32>
    %56 = arith.addf %49, %55 : vector<64x128xf32>
    %c0_44 = arith.constant 0 : index
    %c1_45 = arith.constant 1 : index
    %c3_46 = arith.constant 3 : index
    %c0_47 = arith.constant 0 : index
    %57 = vector.load %arg1[%c0_44, %c1_45, %c3_46, %c0_47] : memref<1x12x12x32xf32, #tpu.memory_space<vmem>>, vector<1x8x8x32xf32>
    %58 = vector.shape_cast %57 : vector<1x8x8x32xf32> to vector<8x8x32xf32>
    %59 = vector.shape_cast %58 : vector<8x8x32xf32> to vector<64x32xf32>
    %60 = arith.truncf %59 : vector<64x32xf32> to vector<64x32xbf16>
    %c256 = arith.constant 256 : index
    %c0_48 = arith.constant 0 : index
    %61 = vector.load %arg2[%c256, %c0_48] : memref<800x128xbf16, #tpu.memory_space<vmem>>, vector<32x128xbf16>
    %cst_49 = arith.constant dense<0.000000e+00> : vector<64x128xf32>
    %62 = tpu.matmul %60, %61, %cst_49 {dimension_numbers = #tpu.dot_dimension_numbers<[1], [0], [0], [1], [0, 0, 1, 1], [], []>} : vector<64x32xbf16>, vector<32x128xbf16>, vector<64x128xf32> -> vector<64x128xf32>
    %63 = arith.addf %56, %62 : vector<64x128xf32>
    %c0_50 = arith.constant 0 : index
    %c1_51 = arith.constant 1 : index
    %c4_52 = arith.constant 4 : index
    %c0_53 = arith.constant 0 : index
    %64 = vector.load %arg1[%c0_50, %c1_51, %c4_52, %c0_53] : memref<1x12x12x32xf32, #tpu.memory_space<vmem>>, vector<1x8x8x32xf32>
    %65 = vector.shape_cast %64 : vector<1x8x8x32xf32> to vector<8x8x32xf32>
    %66 = vector.shape_cast %65 : vector<8x8x32xf32> to vector<64x32xf32>
    %67 = arith.truncf %66 : vector<64x32xf32> to vector<64x32xbf16>
    %c288 = arith.constant 288 : index
    %c0_54 = arith.constant 0 : index
    %68 = vector.load %arg2[%c288, %c0_54] : memref<800x128xbf16, #tpu.memory_space<vmem>>, vector<32x128xbf16>
    %cst_55 = arith.constant dense<0.000000e+00> : vector<64x128xf32>
    %69 = tpu.matmul %67, %68, %cst_55 {dimension_numbers = #tpu.dot_dimension_numbers<[1], [0], [0], [1], [0, 0, 1, 1], [], []>} : vector<64x32xbf16>, vector<32x128xbf16>, vector<64x128xf32> -> vector<64x128xf32>
    %70 = arith.addf %63, %69 : vector<64x128xf32>
    %c0_56 = arith.constant 0 : index
    %c2_57 = arith.constant 2 : index
    %c0_58 = arith.constant 0 : index
    %c0_59 = arith.constant 0 : index
    %71 = vector.load %arg1[%c0_56, %c2_57, %c0_58, %c0_59] : memref<1x12x12x32xf32, #tpu.memory_space<vmem>>, vector<1x8x8x32xf32>
    %72 = vector.shape_cast %71 : vector<1x8x8x32xf32> to vector<8x8x32xf32>
    %73 = vector.shape_cast %72 : vector<8x8x32xf32> to vector<64x32xf32>
    %74 = arith.truncf %73 : vector<64x32xf32> to vector<64x32xbf16>
    %c320 = arith.constant 320 : index
    %c0_60 = arith.constant 0 : index
    %75 = vector.load %arg2[%c320, %c0_60] : memref<800x128xbf16, #tpu.memory_space<vmem>>, vector<32x128xbf16>
    %cst_61 = arith.constant dense<0.000000e+00> : vector<64x128xf32>
    %76 = tpu.matmul %74, %75, %cst_61 {dimension_numbers = #tpu.dot_dimension_numbers<[1], [0], [0], [1], [0, 0, 1, 1], [], []>} : vector<64x32xbf16>, vector<32x128xbf16>, vector<64x128xf32> -> vector<64x128xf32>
    %77 = arith.addf %70, %76 : vector<64x128xf32>
    %c0_62 = arith.constant 0 : index
    %c2_63 = arith.constant 2 : index
    %c1_64 = arith.constant 1 : index
    %c0_65 = arith.constant 0 : index
    %78 = vector.load %arg1[%c0_62, %c2_63, %c1_64, %c0_65] : memref<1x12x12x32xf32, #tpu.memory_space<vmem>>, vector<1x8x8x32xf32>
    %79 = vector.shape_cast %78 : vector<1x8x8x32xf32> to vector<8x8x32xf32>
    %80 = vector.shape_cast %79 : vector<8x8x32xf32> to vector<64x32xf32>
    %81 = arith.truncf %80 : vector<64x32xf32> to vector<64x32xbf16>
    %c352 = arith.constant 352 : index
    %c0_66 = arith.constant 0 : index
    %82 = vector.load %arg2[%c352, %c0_66] : memref<800x128xbf16, #tpu.memory_space<vmem>>, vector<32x128xbf16>
    %cst_67 = arith.constant dense<0.000000e+00> : vector<64x128xf32>
    %83 = tpu.matmul %81, %82, %cst_67 {dimension_numbers = #tpu.dot_dimension_numbers<[1], [0], [0], [1], [0, 0, 1, 1], [], []>} : vector<64x32xbf16>, vector<32x128xbf16>, vector<64x128xf32> -> vector<64x128xf32>
    %84 = arith.addf %77, %83 : vector<64x128xf32>
    %c0_68 = arith.constant 0 : index
    %c2_69 = arith.constant 2 : index
    %c2_70 = arith.constant 2 : index
    %c0_71 = arith.constant 0 : index
    %85 = vector.load %arg1[%c0_68, %c2_69, %c2_70, %c0_71] : memref<1x12x12x32xf32, #tpu.memory_space<vmem>>, vector<1x8x8x32xf32>
    %86 = vector.shape_cast %85 : vector<1x8x8x32xf32> to vector<8x8x32xf32>
    %87 = vector.shape_cast %86 : vector<8x8x32xf32> to vector<64x32xf32>
    %88 = arith.truncf %87 : vector<64x32xf32> to vector<64x32xbf16>
    %c384 = arith.constant 384 : index
    %c0_72 = arith.constant 0 : index
    %89 = vector.load %arg2[%c384, %c0_72] : memref<800x128xbf16, #tpu.memory_space<vmem>>, vector<32x128xbf16>
    %cst_73 = arith.constant dense<0.000000e+00> : vector<64x128xf32>
    %90 = tpu.matmul %88, %89, %cst_73 {dimension_numbers = #tpu.dot_dimension_numbers<[1], [0], [0], [1], [0, 0, 1, 1], [], []>} : vector<64x32xbf16>, vector<32x128xbf16>, vector<64x128xf32> -> vector<64x128xf32>
    %91 = arith.addf %84, %90 : vector<64x128xf32>
    %c0_74 = arith.constant 0 : index
    %c2_75 = arith.constant 2 : index
    %c3_76 = arith.constant 3 : index
    %c0_77 = arith.constant 0 : index
    %92 = vector.load %arg1[%c0_74, %c2_75, %c3_76, %c0_77] : memref<1x12x12x32xf32, #tpu.memory_space<vmem>>, vector<1x8x8x32xf32>
    %93 = vector.shape_cast %92 : vector<1x8x8x32xf32> to vector<8x8x32xf32>
    %94 = vector.shape_cast %93 : vector<8x8x32xf32> to vector<64x32xf32>
    %95 = arith.truncf %94 : vector<64x32xf32> to vector<64x32xbf16>
    %c416 = arith.constant 416 : index
    %c0_78 = arith.constant 0 : index
    %96 = vector.load %arg2[%c416, %c0_78] : memref<800x128xbf16, #tpu.memory_space<vmem>>, vector<32x128xbf16>
    %cst_79 = arith.constant dense<0.000000e+00> : vector<64x128xf32>
    %97 = tpu.matmul %95, %96, %cst_79 {dimension_numbers = #tpu.dot_dimension_numbers<[1], [0], [0], [1], [0, 0, 1, 1], [], []>} : vector<64x32xbf16>, vector<32x128xbf16>, vector<64x128xf32> -> vector<64x128xf32>
    %98 = arith.addf %91, %97 : vector<64x128xf32>
    %c0_80 = arith.constant 0 : index
    %c2_81 = arith.constant 2 : index
    %c4_82 = arith.constant 4 : index
    %c0_83 = arith.constant 0 : index
    %99 = vector.load %arg1[%c0_80, %c2_81, %c4_82, %c0_83] : memref<1x12x12x32xf32, #tpu.memory_space<vmem>>, vector<1x8x8x32xf32>
    %100 = vector.shape_cast %99 : vector<1x8x8x32xf32> to vector<8x8x32xf32>
    %101 = vector.shape_cast %100 : vector<8x8x32xf32> to vector<64x32xf32>
    %102 = arith.truncf %101 : vector<64x32xf32> to vector<64x32xbf16>
    %c448 = arith.constant 448 : index
    %c0_84 = arith.constant 0 : index
    %103 = vector.load %arg2[%c448, %c0_84] : memref<800x128xbf16, #tpu.memory_space<vmem>>, vector<32x128xbf16>
    %cst_85 = arith.constant dense<0.000000e+00> : vector<64x128xf32>
    %104 = tpu.matmul %102, %103, %cst_85 {dimension_numbers = #tpu.dot_dimension_numbers<[1], [0], [0], [1], [0, 0, 1, 1], [], []>} : vector<64x32xbf16>, vector<32x128xbf16>, vector<64x128xf32> -> vector<64x128xf32>
    %105 = arith.addf %98, %104 : vector<64x128xf32>
    %c0_86 = arith.constant 0 : index
    %c3_87 = arith.constant 3 : index
    %c0_88 = arith.constant 0 : index
    %c0_89 = arith.constant 0 : index
    %106 = vector.load %arg1[%c0_86, %c3_87, %c0_88, %c0_89] : memref<1x12x12x32xf32, #tpu.memory_space<vmem>>, vector<1x8x8x32xf32>
    %107 = vector.shape_cast %106 : vector<1x8x8x32xf32> to vector<8x8x32xf32>
    %108 = vector.shape_cast %107 : vector<8x8x32xf32> to vector<64x32xf32>
    %109 = arith.truncf %108 : vector<64x32xf32> to vector<64x32xbf16>
    %c480 = arith.constant 480 : index
    %c0_90 = arith.constant 0 : index
    %110 = vector.load %arg2[%c480, %c0_90] : memref<800x128xbf16, #tpu.memory_space<vmem>>, vector<32x128xbf16>
    %cst_91 = arith.constant dense<0.000000e+00> : vector<64x128xf32>
    %111 = tpu.matmul %109, %110, %cst_91 {dimension_numbers = #tpu.dot_dimension_numbers<[1], [0], [0], [1], [0, 0, 1, 1], [], []>} : vector<64x32xbf16>, vector<32x128xbf16>, vector<64x128xf32> -> vector<64x128xf32>
    %112 = arith.addf %105, %111 : vector<64x128xf32>
    %c0_92 = arith.constant 0 : index
    %c3_93 = arith.constant 3 : index
    %c1_94 = arith.constant 1 : index
    %c0_95 = arith.constant 0 : index
    %113 = vector.load %arg1[%c0_92, %c3_93, %c1_94, %c0_95] : memref<1x12x12x32xf32, #tpu.memory_space<vmem>>, vector<1x8x8x32xf32>
    %114 = vector.shape_cast %113 : vector<1x8x8x32xf32> to vector<8x8x32xf32>
    %115 = vector.shape_cast %114 : vector<8x8x32xf32> to vector<64x32xf32>
    %116 = arith.truncf %115 : vector<64x32xf32> to vector<64x32xbf16>
    %c512 = arith.constant 512 : index
    %c0_96 = arith.constant 0 : index
    %117 = vector.load %arg2[%c512, %c0_96] : memref<800x128xbf16, #tpu.memory_space<vmem>>, vector<32x128xbf16>
    %cst_97 = arith.constant dense<0.000000e+00> : vector<64x128xf32>
    %118 = tpu.matmul %116, %117, %cst_97 {dimension_numbers = #tpu.dot_dimension_numbers<[1], [0], [0], [1], [0, 0, 1, 1], [], []>} : vector<64x32xbf16>, vector<32x128xbf16>, vector<64x128xf32> -> vector<64x128xf32>
    %119 = arith.addf %112, %118 : vector<64x128xf32>
    %c0_98 = arith.constant 0 : index
    %c3_99 = arith.constant 3 : index
    %c2_100 = arith.constant 2 : index
    %c0_101 = arith.constant 0 : index
    %120 = vector.load %arg1[%c0_98, %c3_99, %c2_100, %c0_101] : memref<1x12x12x32xf32, #tpu.memory_space<vmem>>, vector<1x8x8x32xf32>
    %121 = vector.shape_cast %120 : vector<1x8x8x32xf32> to vector<8x8x32xf32>
    %122 = vector.shape_cast %121 : vector<8x8x32xf32> to vector<64x32xf32>
    %123 = arith.truncf %122 : vector<64x32xf32> to vector<64x32xbf16>
    %c544 = arith.constant 544 : index
    %c0_102 = arith.constant 0 : index
    %124 = vector.load %arg2[%c544, %c0_102] : memref<800x128xbf16, #tpu.memory_space<vmem>>, vector<32x128xbf16>
    %cst_103 = arith.constant dense<0.000000e+00> : vector<64x128xf32>
    %125 = tpu.matmul %123, %124, %cst_103 {dimension_numbers = #tpu.dot_dimension_numbers<[1], [0], [0], [1], [0, 0, 1, 1], [], []>} : vector<64x32xbf16>, vector<32x128xbf16>, vector<64x128xf32> -> vector<64x128xf32>
    %126 = arith.addf %119, %125 : vector<64x128xf32>
    %c0_104 = arith.constant 0 : index
    %c3_105 = arith.constant 3 : index
    %c3_106 = arith.constant 3 : index
    %c0_107 = arith.constant 0 : index
    %127 = vector.load %arg1[%c0_104, %c3_105, %c3_106, %c0_107] : memref<1x12x12x32xf32, #tpu.memory_space<vmem>>, vector<1x8x8x32xf32>
    %128 = vector.shape_cast %127 : vector<1x8x8x32xf32> to vector<8x8x32xf32>
    %129 = vector.shape_cast %128 : vector<8x8x32xf32> to vector<64x32xf32>
    %130 = arith.truncf %129 : vector<64x32xf32> to vector<64x32xbf16>
    %c576 = arith.constant 576 : index
    %c0_108 = arith.constant 0 : index
    %131 = vector.load %arg2[%c576, %c0_108] : memref<800x128xbf16, #tpu.memory_space<vmem>>, vector<32x128xbf16>
    %cst_109 = arith.constant dense<0.000000e+00> : vector<64x128xf32>
    %132 = tpu.matmul %130, %131, %cst_109 {dimension_numbers = #tpu.dot_dimension_numbers<[1], [0], [0], [1], [0, 0, 1, 1], [], []>} : vector<64x32xbf16>, vector<32x128xbf16>, vector<64x128xf32> -> vector<64x128xf32>
    %133 = arith.addf %126, %132 : vector<64x128xf32>
    %c0_110 = arith.constant 0 : index
    %c3_111 = arith.constant 3 : index
    %c4_112 = arith.constant 4 : index
    %c0_113 = arith.constant 0 : index
    %134 = vector.load %arg1[%c0_110, %c3_111, %c4_112, %c0_113] : memref<1x12x12x32xf32, #tpu.memory_space<vmem>>, vector<1x8x8x32xf32>
    %135 = vector.shape_cast %134 : vector<1x8x8x32xf32> to vector<8x8x32xf32>
    %136 = vector.shape_cast %135 : vector<8x8x32xf32> to vector<64x32xf32>
    %137 = arith.truncf %136 : vector<64x32xf32> to vector<64x32xbf16>
    %c608 = arith.constant 608 : index
    %c0_114 = arith.constant 0 : index
    %138 = vector.load %arg2[%c608, %c0_114] : memref<800x128xbf16, #tpu.memory_space<vmem>>, vector<32x128xbf16>
    %cst_115 = arith.constant dense<0.000000e+00> : vector<64x128xf32>
    %139 = tpu.matmul %137, %138, %cst_115 {dimension_numbers = #tpu.dot_dimension_numbers<[1], [0], [0], [1], [0, 0, 1, 1], [], []>} : vector<64x32xbf16>, vector<32x128xbf16>, vector<64x128xf32> -> vector<64x128xf32>
    %140 = arith.addf %133, %139 : vector<64x128xf32>
    %c0_116 = arith.constant 0 : index
    %c4_117 = arith.constant 4 : index
    %c0_118 = arith.constant 0 : index
    %c0_119 = arith.constant 0 : index
    %141 = vector.load %arg1[%c0_116, %c4_117, %c0_118, %c0_119] : memref<1x12x12x32xf32, #tpu.memory_space<vmem>>, vector<1x8x8x32xf32>
    %142 = vector.shape_cast %141 : vector<1x8x8x32xf32> to vector<8x8x32xf32>
    %143 = vector.shape_cast %142 : vector<8x8x32xf32> to vector<64x32xf32>
    %144 = arith.truncf %143 : vector<64x32xf32> to vector<64x32xbf16>
    %c640 = arith.constant 640 : index
    %c0_120 = arith.constant 0 : index
    %145 = vector.load %arg2[%c640, %c0_120] : memref<800x128xbf16, #tpu.memory_space<vmem>>, vector<32x128xbf16>
    %cst_121 = arith.constant dense<0.000000e+00> : vector<64x128xf32>
    %146 = tpu.matmul %144, %145, %cst_121 {dimension_numbers = #tpu.dot_dimension_numbers<[1], [0], [0], [1], [0, 0, 1, 1], [], []>} : vector<64x32xbf16>, vector<32x128xbf16>, vector<64x128xf32> -> vector<64x128xf32>
    %147 = arith.addf %140, %146 : vector<64x128xf32>
    %c0_122 = arith.constant 0 : index
    %c4_123 = arith.constant 4 : index
    %c1_124 = arith.constant 1 : index
    %c0_125 = arith.constant 0 : index
    %148 = vector.load %arg1[%c0_122, %c4_123, %c1_124, %c0_125] : memref<1x12x12x32xf32, #tpu.memory_space<vmem>>, vector<1x8x8x32xf32>
    %149 = vector.shape_cast %148 : vector<1x8x8x32xf32> to vector<8x8x32xf32>
    %150 = vector.shape_cast %149 : vector<8x8x32xf32> to vector<64x32xf32>
    %151 = arith.truncf %150 : vector<64x32xf32> to vector<64x32xbf16>
    %c672 = arith.constant 672 : index
    %c0_126 = arith.constant 0 : index
    %152 = vector.load %arg2[%c672, %c0_126] : memref<800x128xbf16, #tpu.memory_space<vmem>>, vector<32x128xbf16>
    %cst_127 = arith.constant dense<0.000000e+00> : vector<64x128xf32>
    %153 = tpu.matmul %151, %152, %cst_127 {dimension_numbers = #tpu.dot_dimension_numbers<[1], [0], [0], [1], [0, 0, 1, 1], [], []>} : vector<64x32xbf16>, vector<32x128xbf16>, vector<64x128xf32> -> vector<64x128xf32>
    %154 = arith.addf %147, %153 : vector<64x128xf32>
    %c0_128 = arith.constant 0 : index
    %c4_129 = arith.constant 4 : index
    %c2_130 = arith.constant 2 : index
    %c0_131 = arith.constant 0 : index
    %155 = vector.load %arg1[%c0_128, %c4_129, %c2_130, %c0_131] : memref<1x12x12x32xf32, #tpu.memory_space<vmem>>, vector<1x8x8x32xf32>
    %156 = vector.shape_cast %155 : vector<1x8x8x32xf32> to vector<8x8x32xf32>
    %157 = vector.shape_cast %156 : vector<8x8x32xf32> to vector<64x32xf32>
    %158 = arith.truncf %157 : vector<64x32xf32> to vector<64x32xbf16>
    %c704 = arith.constant 704 : index
    %c0_132 = arith.constant 0 : index
    %159 = vector.load %arg2[%c704, %c0_132] : memref<800x128xbf16, #tpu.memory_space<vmem>>, vector<32x128xbf16>
    %cst_133 = arith.constant dense<0.000000e+00> : vector<64x128xf32>
    %160 = tpu.matmul %158, %159, %cst_133 {dimension_numbers = #tpu.dot_dimension_numbers<[1], [0], [0], [1], [0, 0, 1, 1], [], []>} : vector<64x32xbf16>, vector<32x128xbf16>, vector<64x128xf32> -> vector<64x128xf32>
    %161 = arith.addf %154, %160 : vector<64x128xf32>
    %c0_134 = arith.constant 0 : index
    %c4_135 = arith.constant 4 : index
    %c3_136 = arith.constant 3 : index
    %c0_137 = arith.constant 0 : index
    %162 = vector.load %arg1[%c0_134, %c4_135, %c3_136, %c0_137] : memref<1x12x12x32xf32, #tpu.memory_space<vmem>>, vector<1x8x8x32xf32>
    %163 = vector.shape_cast %162 : vector<1x8x8x32xf32> to vector<8x8x32xf32>
    %164 = vector.shape_cast %163 : vector<8x8x32xf32> to vector<64x32xf32>
    %165 = arith.truncf %164 : vector<64x32xf32> to vector<64x32xbf16>
    %c736 = arith.constant 736 : index
    %c0_138 = arith.constant 0 : index
    %166 = vector.load %arg2[%c736, %c0_138] : memref<800x128xbf16, #tpu.memory_space<vmem>>, vector<32x128xbf16>
    %cst_139 = arith.constant dense<0.000000e+00> : vector<64x128xf32>
    %167 = tpu.matmul %165, %166, %cst_139 {dimension_numbers = #tpu.dot_dimension_numbers<[1], [0], [0], [1], [0, 0, 1, 1], [], []>} : vector<64x32xbf16>, vector<32x128xbf16>, vector<64x128xf32> -> vector<64x128xf32>
    %168 = arith.addf %161, %167 : vector<64x128xf32>
    %c0_140 = arith.constant 0 : index
    %c4_141 = arith.constant 4 : index
    %c4_142 = arith.constant 4 : index
    %c0_143 = arith.constant 0 : index
    %169 = vector.load %arg1[%c0_140, %c4_141, %c4_142, %c0_143] : memref<1x12x12x32xf32, #tpu.memory_space<vmem>>, vector<1x8x8x32xf32>
    %170 = vector.shape_cast %169 : vector<1x8x8x32xf32> to vector<8x8x32xf32>
    %171 = vector.shape_cast %170 : vector<8x8x32xf32> to vector<64x32xf32>
    %172 = arith.truncf %171 : vector<64x32xf32> to vector<64x32xbf16>
    %c768 = arith.constant 768 : index
    %c0_144 = arith.constant 0 : index
    %173 = vector.load %arg2[%c768, %c0_144] : memref<800x128xbf16, #tpu.memory_space<vmem>>, vector<32x128xbf16>
    %cst_145 = arith.constant dense<0.000000e+00> : vector<64x128xf32>
    %174 = tpu.matmul %172, %173, %cst_145 {dimension_numbers = #tpu.dot_dimension_numbers<[1], [0], [0], [1], [0, 0, 1, 1], [], []>} : vector<64x32xbf16>, vector<32x128xbf16>, vector<64x128xf32> -> vector<64x128xf32>
    %175 = arith.addf %168, %174 : vector<64x128xf32>
    %c0_146 = arith.constant 0 : index
    %c0_147 = arith.constant 0 : index
    %176 = vector.load %arg3[%c0_146, %c0_147] : memref<1x128xf32, #tpu.memory_space<vmem>>, vector<1x128xf32>
    %177 = vector.broadcast %176 : vector<1x128xf32> to vector<64x128xf32>
    %178 = arith.addf %175, %177 : vector<64x128xf32>
    %179 = arith.truncf %178 : vector<64x128xf32> to vector<64x128xbf16>
    %c0_148 = arith.constant 0 : index
    %c0_149 = arith.constant 0 : index
    %180 = vector.load %arg4[%c0_148, %c0_149] : memref<64x128xbf16, #tpu.memory_space<vmem>>, vector<64x128xbf16>
    tpu.vector_store %arg4[%c0_148, %c0_149], %179 {strides = array<i32>} : memref<64x128xbf16, #tpu.memory_space<vmem>>, vector<64x128xbf16>,
    %cst_150 = arith.constant dense<0.000000e+00> : vector<128xf32>
    %181 = vector.multi_reduction <add>, %178, %cst_150 [0] : vector<64x128xf32> to vector<128xf32>
    %182 = vector.shape_cast %181 : vector<128xf32> to vector<1x128xf32>
    %183 = vector.shape_cast %182 : vector<1x128xf32> to vector<1x1x128xf32>
    %c0_151 = arith.constant 0 : index
    %c0_152 = arith.constant 0 : index
    %c0_153 = arith.constant 0 : index
    %184 = vector.load %arg5[%c0_151, %c0_152, %c0_153] : memref<1x1x128xf32, #tpu.memory_space<vmem>>, vector<1x1x128xf32>
    tpu.vector_store %arg5[%c0_151, %c0_152, %c0_153], %183 {strides = array<i32>} : memref<1x1x128xf32, #tpu.memory_space<vmem>>, vector<1x1x128xf32>,
    %185 = arith.mulf %178, %178 : vector<64x128xf32>
    %cst_154 = arith.constant dense<0.000000e+00> : vector<128xf32>
    %186 = vector.multi_reduction <add>, %185, %cst_154 [0] : vector<64x128xf32> to vector<128xf32>
    %187 = vector.shape_cast %186 : vector<128xf32> to vector<1x128xf32>
    %188 = vector.shape_cast %187 : vector<1x128xf32> to vector<1x1x128xf32>
    %c0_155 = arith.constant 0 : index
    %c0_156 = arith.constant 0 : index
    %c0_157 = arith.constant 0 : index
    %189 = vector.load %arg6[%c0_155, %c0_156, %c0_157] : memref<1x1x128xf32, #tpu.memory_space<vmem>>, vector<1x1x128xf32>
    tpu.vector_store %arg6[%c0_155, %c0_156, %c0_157], %188 {strides = array<i32>} : memref<1x1x128xf32, #tpu.memory_space<vmem>>, vector<1x1x128xf32>,
    return
  }
  func.func @transform_0(%arg0: i32) -> (i32, i32, i32, i32) {
    %c0_i32 = arith.constant 0 : i32
    %c0_i32_0 = arith.constant 0 : i32
    %c0_i32_1 = arith.constant 0 : i32
    %c0_i32_2 = arith.constant 0 : i32
    return %arg0, %c0_i32, %c0_i32_0, %c0_i32_1 : i32, i32, i32, i32
  }
  func.func @transform_1(%arg0: i32) -> (i32, i32) {
    %c0_i32 = arith.constant 0 : i32
    %c0_i32_0 = arith.constant 0 : i32
    %c0_i32_1 = arith.constant 0 : i32
    return %c0_i32, %c0_i32_0 : i32, i32
  }
  func.func @transform_2(%arg0: i32) -> (i32, i32) {
    %c0_i32 = arith.constant 0 : i32
    %c0_i32_0 = arith.constant 0 : i32
    %c0_i32_1 = arith.constant 0 : i32
    return %c0_i32, %c0_i32_0 : i32, i32
  }
  func.func @transform_3(%arg0: i32) -> (i32, i32) {
    %c0_i32 = arith.constant 0 : i32
    %c0_i32_0 = arith.constant 0 : i32
    return %arg0, %c0_i32 : i32, i32
  }
  func.func @transform_4(%arg0: i32) -> (i32, i32, i32) {
    %c0_i32 = arith.constant 0 : i32
    %c0_i32_0 = arith.constant 0 : i32
    %c0_i32_1 = arith.constant 0 : i32
    return %arg0, %c0_i32, %c0_i32_0 : i32, i32, i32
  }
  func.func @transform_5(%arg0: i32) -> (i32, i32, i32) {
    %c0_i32 = arith.constant 0 : i32
    %c0_i32_0 = arith.constant 0 : i32
    %c0_i32_1 = arith.constant 0 : i32
    return %arg0, %c0_i32, %c0_i32_0 : i32, i32, i32
  }
}

module attributes {stable_mosaic.version = 11 : i64} {
  func.func @_gate_kernel(%arg0: i32, %arg1: memref<64x32xf32, #tpu.memory_space<vmem>>, %arg2: memref<32x128xf32, #tpu.memory_space<vmem>>, %arg3: memref<1x128xf32, #tpu.memory_space<vmem>>, %arg4: memref<128x128xf32, #tpu.memory_space<vmem>>, %arg5: memref<1x128xf32, #tpu.memory_space<vmem>>, %arg6: memref<1x1x128xf32, #tpu.memory_space<vmem>>) attributes {dimension_semantics = [#tpu.dimension_semantics<parallel>], iteration_bounds = array<i64: 2>, scalar_prefetch = 0 : i64, scratch_operands = 0 : i64, tpu.core_type = #tpu.core_type<tc>, window_params = [{transform_indices = @transform_0, window_bounds = array<i64: 64, 32>}, {pipeline_mode = #tpu.pipeline_mode<synchronous>, transform_indices = @transform_1, window_bounds = array<i64: 32, 128>}, {pipeline_mode = #tpu.pipeline_mode<synchronous>, transform_indices = @transform_2, window_bounds = array<i64: 1, 128>}, {pipeline_mode = #tpu.pipeline_mode<synchronous>, transform_indices = @transform_3, window_bounds = array<i64: 128, 128>}, {pipeline_mode = #tpu.pipeline_mode<synchronous>, transform_indices = @transform_4, window_bounds = array<i64: 1, 128>}, {transform_indices = @transform_5, window_bounds = array<i64: 1, 1, 128>}]} {
    %c0 = arith.constant 0 : index
    %c0_0 = arith.constant 0 : index
    %0 = vector.load %arg1[%c0, %c0_0] : memref<64x32xf32, #tpu.memory_space<vmem>>, vector<64x32xf32>
    %cst = arith.constant dense<0.000000e+00> : vector<32xf32>
    %1 = vector.multi_reduction <add>, %0, %cst [0] : vector<64x32xf32> to vector<32xf32>
    %2 = vector.shape_cast %1 : vector<32xf32> to vector<1x32xf32>
    %cst_1 = arith.constant 6.400000e+01 : f32
    %3 = vector.broadcast %cst_1 : f32 to vector<1x32xf32>
    %4 = arith.divf %2, %3 : vector<1x32xf32>
    %c0_2 = arith.constant 0 : index
    %c0_3 = arith.constant 0 : index
    %5 = vector.load %arg2[%c0_2, %c0_3] : memref<32x128xf32, #tpu.memory_space<vmem>>, vector<32x128xf32>
    %cst_4 = arith.constant dense<0.000000e+00> : vector<1x128xf32>
    %6 = tpu.matmul %4, %5, %cst_4 {dimension_numbers = #tpu.dot_dimension_numbers<[1], [0], [0], [1], [0, 0, 1, 1], [], []>} : vector<1x32xf32>, vector<32x128xf32>, vector<1x128xf32> -> vector<1x128xf32>
    %c0_5 = arith.constant 0 : index
    %c0_6 = arith.constant 0 : index
    %7 = vector.load %arg3[%c0_5, %c0_6] : memref<1x128xf32, #tpu.memory_space<vmem>>, vector<1x128xf32>
    %8 = arith.addf %6, %7 : vector<1x128xf32>
    %cst_7 = arith.constant 0.000000e+00 : f32
    %9 = vector.broadcast %cst_7 : f32 to vector<1x128xf32>
    %10 = arith.maximumf %8, %9 : vector<1x128xf32>
    %c0_8 = arith.constant 0 : index
    %c0_9 = arith.constant 0 : index
    %11 = vector.load %arg4[%c0_8, %c0_9] : memref<128x128xf32, #tpu.memory_space<vmem>>, vector<128x128xf32>
    %cst_10 = arith.constant dense<0.000000e+00> : vector<1x128xf32>
    %12 = tpu.matmul %10, %11, %cst_10 {dimension_numbers = #tpu.dot_dimension_numbers<[1], [0], [0], [1], [0, 0, 1, 1], [], []>} : vector<1x128xf32>, vector<128x128xf32>, vector<1x128xf32> -> vector<1x128xf32>
    %c0_11 = arith.constant 0 : index
    %c0_12 = arith.constant 0 : index
    %13 = vector.load %arg5[%c0_11, %c0_12] : memref<1x128xf32, #tpu.memory_space<vmem>>, vector<1x128xf32>
    %14 = arith.addf %12, %13 : vector<1x128xf32>
    %15 = arith.negf %14 : vector<1x128xf32>
    %16 = math.exp %15 : vector<1x128xf32>
    %cst_13 = arith.constant 1.000000e+00 : f32
    %17 = vector.broadcast %cst_13 : f32 to vector<1x128xf32>
    %18 = arith.addf %17, %16 : vector<1x128xf32>
    %19 = arith.divf %17, %18 : vector<1x128xf32>
    %20 = vector.shape_cast %19 : vector<1x128xf32> to vector<1x1x128xf32>
    %c0_14 = arith.constant 0 : index
    %c0_15 = arith.constant 0 : index
    %c0_16 = arith.constant 0 : index
    %21 = vector.load %arg6[%c0_14, %c0_15, %c0_16] : memref<1x1x128xf32, #tpu.memory_space<vmem>>, vector<1x1x128xf32>
    tpu.vector_store %arg6[%c0_14, %c0_15, %c0_16], %20 {strides = array<i32>} : memref<1x1x128xf32, #tpu.memory_space<vmem>>, vector<1x1x128xf32>,
    return
  }
  func.func @transform_0(%arg0: i32) -> (i32, i32) {
    %c0_i32 = arith.constant 0 : i32
    %c0_i32_0 = arith.constant 0 : i32
    return %arg0, %c0_i32 : i32, i32
  }
  func.func @transform_1(%arg0: i32) -> (i32, i32) {
    %c0_i32 = arith.constant 0 : i32
    %c0_i32_0 = arith.constant 0 : i32
    %c0_i32_1 = arith.constant 0 : i32
    return %c0_i32, %c0_i32_0 : i32, i32
  }
  func.func @transform_2(%arg0: i32) -> (i32, i32) {
    %c0_i32 = arith.constant 0 : i32
    %c0_i32_0 = arith.constant 0 : i32
    %c0_i32_1 = arith.constant 0 : i32
    return %c0_i32, %c0_i32_0 : i32, i32
  }
  func.func @transform_3(%arg0: i32) -> (i32, i32) {
    %c0_i32 = arith.constant 0 : i32
    %c0_i32_0 = arith.constant 0 : i32
    %c0_i32_1 = arith.constant 0 : i32
    return %c0_i32, %c0_i32_0 : i32, i32
  }
  func.func @transform_4(%arg0: i32) -> (i32, i32) {
    %c0_i32 = arith.constant 0 : i32
    %c0_i32_0 = arith.constant 0 : i32
    %c0_i32_1 = arith.constant 0 : i32
    return %c0_i32, %c0_i32_0 : i32, i32
  }
  func.func @transform_5(%arg0: i32) -> (i32, i32, i32) {
    %c0_i32 = arith.constant 0 : i32
    %c0_i32_0 = arith.constant 0 : i32
    %c0_i32_1 = arith.constant 0 : i32
    return %arg0, %c0_i32, %c0_i32_0 : i32, i32, i32
  }
}

module attributes {stable_mosaic.version = 11 : i64} {
  func.func @_mix_kernel(%arg0: i32, %arg1: memref<64x128xbf16, #tpu.memory_space<vmem>>, %arg2: memref<1x128xf32, #tpu.memory_space<vmem>>, %arg3: memref<1x128xf32, #tpu.memory_space<vmem>>, %arg4: memref<128x128xbf16, #tpu.memory_space<vmem>>, %arg5: memref<1x128xf32, #tpu.memory_space<vmem>>, %arg6: memref<64x128xf32, #tpu.memory_space<vmem>>, %arg7: memref<1x1x128xf32, #tpu.memory_space<vmem>>, %arg8: memref<1x1x128xf32, #tpu.memory_space<vmem>>) attributes {dimension_semantics = [#tpu.dimension_semantics<parallel>], iteration_bounds = array<i64: 2>, scalar_prefetch = 0 : i64, scratch_operands = 0 : i64, tpu.core_type = #tpu.core_type<tc>, window_params = [{transform_indices = @transform_0, window_bounds = array<i64: 64, 128>}, {pipeline_mode = #tpu.pipeline_mode<synchronous>, transform_indices = @transform_1, window_bounds = array<i64: 1, 128>}, {pipeline_mode = #tpu.pipeline_mode<synchronous>, transform_indices = @transform_2, window_bounds = array<i64: 1, 128>}, {pipeline_mode = #tpu.pipeline_mode<synchronous>, transform_indices = @transform_3, window_bounds = array<i64: 128, 128>}, {pipeline_mode = #tpu.pipeline_mode<synchronous>, transform_indices = @transform_4, window_bounds = array<i64: 1, 128>}, {transform_indices = @transform_5, window_bounds = array<i64: 64, 128>}, {transform_indices = @transform_6, window_bounds = array<i64: 1, 1, 128>}, {transform_indices = @transform_7, window_bounds = array<i64: 1, 1, 128>}]} {
    %c0 = arith.constant 0 : index
    %c0_0 = arith.constant 0 : index
    %0 = vector.load %arg1[%c0, %c0_0] : memref<64x128xbf16, #tpu.memory_space<vmem>>, vector<64x128xbf16>
    %1 = arith.extf %0 : vector<64x128xbf16> to vector<64x128xf32>
    %c0_1 = arith.constant 0 : index
    %c0_2 = arith.constant 0 : index
    %2 = vector.load %arg2[%c0_1, %c0_2] : memref<1x128xf32, #tpu.memory_space<vmem>>, vector<1x128xf32>
    %3 = vector.broadcast %2 : vector<1x128xf32> to vector<64x128xf32>
    %4 = arith.mulf %1, %3 : vector<64x128xf32>
    %c0_3 = arith.constant 0 : index
    %c0_4 = arith.constant 0 : index
    %5 = vector.load %arg3[%c0_3, %c0_4] : memref<1x128xf32, #tpu.memory_space<vmem>>, vector<1x128xf32>
    %6 = vector.broadcast %5 : vector<1x128xf32> to vector<64x128xf32>
    %7 = arith.addf %4, %6 : vector<64x128xf32>
    %cst = arith.constant 0.000000e+00 : f32
    %8 = vector.broadcast %cst : f32 to vector<64x128xf32>
    %9 = arith.maximumf %7, %8 : vector<64x128xf32>
    %10 = arith.truncf %9 : vector<64x128xf32> to vector<64x128xbf16>
    %c0_5 = arith.constant 0 : index
    %c0_6 = arith.constant 0 : index
    %11 = vector.load %arg4[%c0_5, %c0_6] : memref<128x128xbf16, #tpu.memory_space<vmem>>, vector<128x128xbf16>
    %cst_7 = arith.constant dense<0.000000e+00> : vector<64x128xf32>
    %12 = tpu.matmul %10, %11, %cst_7 {dimension_numbers = #tpu.dot_dimension_numbers<[1], [0], [0], [1], [0, 0, 1, 1], [], []>} : vector<64x128xbf16>, vector<128x128xbf16>, vector<64x128xf32> -> vector<64x128xf32>
    %c0_8 = arith.constant 0 : index
    %c0_9 = arith.constant 0 : index
    %13 = vector.load %arg5[%c0_8, %c0_9] : memref<1x128xf32, #tpu.memory_space<vmem>>, vector<1x128xf32>
    %14 = vector.broadcast %13 : vector<1x128xf32> to vector<64x128xf32>
    %15 = arith.addf %12, %14 : vector<64x128xf32>
    %c0_10 = arith.constant 0 : index
    %c0_11 = arith.constant 0 : index
    %16 = vector.load %arg6[%c0_10, %c0_11] : memref<64x128xf32, #tpu.memory_space<vmem>>, vector<64x128xf32>
    tpu.vector_store %arg6[%c0_10, %c0_11], %15 {strides = array<i32>} : memref<64x128xf32, #tpu.memory_space<vmem>>, vector<64x128xf32>,
    %cst_12 = arith.constant dense<0.000000e+00> : vector<128xf32>
    %17 = vector.multi_reduction <add>, %15, %cst_12 [0] : vector<64x128xf32> to vector<128xf32>
    %18 = vector.shape_cast %17 : vector<128xf32> to vector<1x128xf32>
    %19 = vector.shape_cast %18 : vector<1x128xf32> to vector<1x1x128xf32>
    %c0_13 = arith.constant 0 : index
    %c0_14 = arith.constant 0 : index
    %c0_15 = arith.constant 0 : index
    %20 = vector.load %arg7[%c0_13, %c0_14, %c0_15] : memref<1x1x128xf32, #tpu.memory_space<vmem>>, vector<1x1x128xf32>
    tpu.vector_store %arg7[%c0_13, %c0_14, %c0_15], %19 {strides = array<i32>} : memref<1x1x128xf32, #tpu.memory_space<vmem>>, vector<1x1x128xf32>,
    %21 = arith.mulf %15, %15 : vector<64x128xf32>
    %cst_16 = arith.constant dense<0.000000e+00> : vector<128xf32>
    %22 = vector.multi_reduction <add>, %21, %cst_16 [0] : vector<64x128xf32> to vector<128xf32>
    %23 = vector.shape_cast %22 : vector<128xf32> to vector<1x128xf32>
    %24 = vector.shape_cast %23 : vector<1x128xf32> to vector<1x1x128xf32>
    %c0_17 = arith.constant 0 : index
    %c0_18 = arith.constant 0 : index
    %c0_19 = arith.constant 0 : index
    %25 = vector.load %arg8[%c0_17, %c0_18, %c0_19] : memref<1x1x128xf32, #tpu.memory_space<vmem>>, vector<1x1x128xf32>
    tpu.vector_store %arg8[%c0_17, %c0_18, %c0_19], %24 {strides = array<i32>} : memref<1x1x128xf32, #tpu.memory_space<vmem>>, vector<1x1x128xf32>,
    return
  }
  func.func @transform_0(%arg0: i32) -> (i32, i32) {
    %c0_i32 = arith.constant 0 : i32
    %c0_i32_0 = arith.constant 0 : i32
    return %arg0, %c0_i32 : i32, i32
  }
  func.func @transform_1(%arg0: i32) -> (i32, i32) {
    %c0_i32 = arith.constant 0 : i32
    %c0_i32_0 = arith.constant 0 : i32
    %c0_i32_1 = arith.constant 0 : i32
    return %c0_i32, %c0_i32_0 : i32, i32
  }
  func.func @transform_2(%arg0: i32) -> (i32, i32) {
    %c0_i32 = arith.constant 0 : i32
    %c0_i32_0 = arith.constant 0 : i32
    %c0_i32_1 = arith.constant 0 : i32
    return %c0_i32, %c0_i32_0 : i32, i32
  }
  func.func @transform_3(%arg0: i32) -> (i32, i32) {
    %c0_i32 = arith.constant 0 : i32
    %c0_i32_0 = arith.constant 0 : i32
    %c0_i32_1 = arith.constant 0 : i32
    return %c0_i32, %c0_i32_0 : i32, i32
  }
  func.func @transform_4(%arg0: i32) -> (i32, i32) {
    %c0_i32 = arith.constant 0 : i32
    %c0_i32_0 = arith.constant 0 : i32
    %c0_i32_1 = arith.constant 0 : i32
    return %c0_i32, %c0_i32_0 : i32, i32
  }
  func.func @transform_5(%arg0: i32) -> (i32, i32) {
    %c0_i32 = arith.constant 0 : i32
    %c0_i32_0 = arith.constant 0 : i32
    return %arg0, %c0_i32 : i32, i32
  }
  func.func @transform_6(%arg0: i32) -> (i32, i32, i32) {
    %c0_i32 = arith.constant 0 : i32
    %c0_i32_0 = arith.constant 0 : i32
    %c0_i32_1 = arith.constant 0 : i32
    return %arg0, %c0_i32, %c0_i32_0 : i32, i32, i32
  }
  func.func @transform_7(%arg0: i32) -> (i32, i32, i32) {
    %c0_i32 = arith.constant 0 : i32
    %c0_i32_0 = arith.constant 0 : i32
    %c0_i32_1 = arith.constant 0 : i32
    return %arg0, %c0_i32, %c0_i32_0 : i32, i32, i32
  }
}

module attributes {stable_mosaic.version = 11 : i64} {
  func.func @_out_kernel(%arg0: i32, %arg1: memref<64x128xf32, #tpu.memory_space<vmem>>, %arg2: memref<1x128xf32, #tpu.memory_space<vmem>>, %arg3: memref<1x128xf32, #tpu.memory_space<vmem>>, %arg4: memref<64x128xf32, #tpu.memory_space<vmem>>, %arg5: memref<1x1x128xf32, #tpu.memory_space<vmem>>, %arg6: memref<64x128xf32, #tpu.memory_space<vmem>>) attributes {dimension_semantics = [#tpu.dimension_semantics<parallel>], iteration_bounds = array<i64: 2>, scalar_prefetch = 0 : i64, scratch_operands = 0 : i64, tpu.core_type = #tpu.core_type<tc>, window_params = [{transform_indices = @transform_0, window_bounds = array<i64: 64, 128>}, {pipeline_mode = #tpu.pipeline_mode<synchronous>, transform_indices = @transform_1, window_bounds = array<i64: 1, 128>}, {pipeline_mode = #tpu.pipeline_mode<synchronous>, transform_indices = @transform_2, window_bounds = array<i64: 1, 128>}, {transform_indices = @transform_3, window_bounds = array<i64: 64, 128>}, {transform_indices = @transform_4, window_bounds = array<i64: 1, 1, 128>}, {transform_indices = @transform_5, window_bounds = array<i64: 64, 128>}]} {
    %c0 = arith.constant 0 : index
    %c0_0 = arith.constant 0 : index
    %0 = vector.load %arg1[%c0, %c0_0] : memref<64x128xf32, #tpu.memory_space<vmem>>, vector<64x128xf32>
    %c0_1 = arith.constant 0 : index
    %c0_2 = arith.constant 0 : index
    %1 = vector.load %arg2[%c0_1, %c0_2] : memref<1x128xf32, #tpu.memory_space<vmem>>, vector<1x128xf32>
    %2 = vector.broadcast %1 : vector<1x128xf32> to vector<64x128xf32>
    %3 = arith.mulf %0, %2 : vector<64x128xf32>
    %c0_3 = arith.constant 0 : index
    %c0_4 = arith.constant 0 : index
    %4 = vector.load %arg3[%c0_3, %c0_4] : memref<1x128xf32, #tpu.memory_space<vmem>>, vector<1x128xf32>
    %5 = vector.broadcast %4 : vector<1x128xf32> to vector<64x128xf32>
    %6 = arith.addf %3, %5 : vector<64x128xf32>
    %cst = arith.constant 0.000000e+00 : f32
    %7 = vector.broadcast %cst : f32 to vector<64x128xf32>
    %8 = arith.maximumf %6, %7 : vector<64x128xf32>
    %c0_5 = arith.constant 0 : index
    %c0_6 = arith.constant 0 : index
    %9 = vector.load %arg4[%c0_5, %c0_6] : memref<64x128xf32, #tpu.memory_space<vmem>>, vector<64x128xf32>
    %c0_7 = arith.constant 0 : index
    %c0_8 = arith.constant 0 : index
    %c0_9 = arith.constant 0 : index
    %10 = vector.load %arg5[%c0_7, %c0_8, %c0_9] : memref<1x1x128xf32, #tpu.memory_space<vmem>>, vector<1x1x128xf32>
    %11 = vector.shape_cast %10 : vector<1x1x128xf32> to vector<1x128xf32>
    %12 = vector.broadcast %11 : vector<1x128xf32> to vector<64x128xf32>
    %13 = arith.mulf %9, %12 : vector<64x128xf32>
    %14 = arith.addf %8, %13 : vector<64x128xf32>
    %c0_10 = arith.constant 0 : index
    %c0_11 = arith.constant 0 : index
    %15 = vector.load %arg6[%c0_10, %c0_11] : memref<64x128xf32, #tpu.memory_space<vmem>>, vector<64x128xf32>
    tpu.vector_store %arg6[%c0_10, %c0_11], %14 {strides = array<i32>} : memref<64x128xf32, #tpu.memory_space<vmem>>, vector<64x128xf32>,
    return
  }
  func.func @transform_0(%arg0: i32) -> (i32, i32) {
    %c0_i32 = arith.constant 0 : i32
    %c0_i32_0 = arith.constant 0 : i32
    return %arg0, %c0_i32 : i32, i32
  }
  func.func @transform_1(%arg0: i32) -> (i32, i32) {
    %c0_i32 = arith.constant 0 : i32
    %c0_i32_0 = arith.constant 0 : i32
    %c0_i32_1 = arith.constant 0 : i32
    return %c0_i32, %c0_i32_0 : i32, i32
  }
  func.func @transform_2(%arg0: i32) -> (i32, i32) {
    %c0_i32 = arith.constant 0 : i32
    %c0_i32_0 = arith.constant 0 : i32
    %c0_i32_1 = arith.constant 0 : i32
    return %c0_i32, %c0_i32_0 : i32, i32
  }
  func.func @transform_3(%arg0: i32) -> (i32, i32) {
    %c0_i32 = arith.constant 0 : i32
    %c0_i32_0 = arith.constant 0 : i32
    return %arg0, %c0_i32 : i32, i32
  }
  func.func @transform_4(%arg0: i32) -> (i32, i32, i32) {
    %c0_i32 = arith.constant 0 : i32
    %c0_i32_0 = arith.constant 0 : i32
    %c0_i32_1 = arith.constant 0 : i32
    return %arg0, %c0_i32, %c0_i32_0 : i32, i32, i32
  }
  func.func @transform_5(%arg0: i32) -> (i32, i32) {
    %c0_i32 = arith.constant 0 : i32
    %c0_i32_0 = arith.constant 0 : i32
    return %arg0, %c0_i32 : i32, i32
  }
}

</mosaic_0001>

<bundles_post_ra>
// kernel: inception_forward.6
= control target key start
LH: loop header
LB: loop body
LE: loop exit
PB: predicated region body
PF: predicated region fallthrough
CT: control target
= control target key end

     0   :  { %s640_s18 = smov 0   ;;  %s747_s0 = inlined_call_operand.vmem [shape: f32[128,32], index: 0, kind: input, shape index: {}]   ;;  %s748_s1 = inlined_call_operand.vmem [shape: f32[32,128], index: 1, kind: input, shape index: {}]   ;;  %s749_s2 = inlined_call_operand.vmem [shape: f32[1,128], index: 2, kind: input, shape index: {}]   ;;  %s750_s3 = inlined_call_operand.vmem [shape: f32[128,128], index: 3, kind: input, shape index: {}]   ;;  %s751_s4 = inlined_call_operand.vmem [shape: f32[1,128], index: 4, kind: input, shape index: {}]   ;;  %s752_s5 = inlined_call_operand.vmem [shape: f32[2,1,128], index: 5, kind: output, shape index: {}]  }
   0x1 LB: > { %s646_s19 = sadd.s32 4294967295, %s605_s18   ;;  %p479_p0 = scmp.ge.s32.totalorder %s605_s18, 1  ;;  %s605_s18 = sphi %s640_s18, %s15_s18  }
   0x2   : > { %p188_p1 = scmp.lt.s32.totalorder %s605_s18, 3 }
   0x4   : > { %p189_p2 = pnand %p479_p0, %p188_p1 }
   0x5   : > { %v255_v0 = vld [vmem:[%s748_s1] sm:$0xff] (!%p189_p2)  ;;  %v256_v1 = vld [vmem:[%s748_s1 + $0x8] sm:$0xff] (!%p189_p2)  ;;  %v257_v2 = vld [vmem:[%s748_s1 + $0x10] sm:$0xff] (!%p189_p2)  ;;  %v607_v3 = vmov (!%p189_p2), 0.0|0.0   ;;  %vm608_vm0 = vmmov (!%p189_p2), 0   ;;  %v609_v6 = vmov (!%p189_p2), 0.0  }
   0x6   : > { %192 = sbr.rel (%p189_p2) target bundleno = 503 (0x1f7), region = 40  ;;  %554 = vmatprep.subr.bf16.mxu0 (!%p189_p2), %v607_v3  ;;  %v555_v4 = vpack.c.bf16 (!%p189_p2), %v256_v1, %v255_v0  ;;  %v258_v5 = vld [vmem:[%s748_s1 + $0x18] sm:$0xff] (!%p189_p2)  ;;  %516 = vmatprep.mubr.msk.f32.mxu0 (!%p189_p2), %vm608_vm0, %v609_v6  ;;  %s480_s28 = sshll.u32 (!%p189_p2), %s646_s19, 3  ;;  %v334_v7 = vld [vmem:[%s750_s3] sm:$0xff] (!%p189_p2)  ;;  %v335_v8 = vld [vmem:[%s750_s3 + $0x8] sm:$0xff] (!%p189_p2)  ;;  %vm231_vm1 = vcmask (!%p189_p2), 261120  }
   0x7   : > { %p215_p3 = scmp.lt.s32.totalorder (!%p189_p2), %s480_s28, 15  ;;  %560 = vmatprep.subr.bf16.mxu1 (!%p189_p2), %v607_v3  ;;  %v561_v9 = vpack.c.bf16 (!%p189_p2), %v335_v8, %v334_v7  ;;  %v336_v10 = vld [vmem:[%s750_s3 + $0x10] sm:$0xff] (!%p189_p2)  ;;  %v337_v11 = vld [vmem:[%s750_s3 + $0x18] sm:$0xff] (!%p189_p2)  ;;  %551 = vmatprep.mubr.msk.f32.mxu1 (!%p189_p2), %vm608_vm0, %v609_v6  ;;  %v558_v12 = vpack.c.bf16 (!%p189_p2), %v258_v5, %v257_v2  ;;  %v338_v14 = vld [vmem:[%s750_s3 + $0x20] sm:$0xff] (!%p189_p2)  ;;  %p220_p4 = scmp.lt.s32.totalorder (!%p189_p2), %s646_s19, 1 }
   0x8   : > { %556 = vmatpush3.bf16.msra.mxu0 (!%p189_p2), %v555_v4  ;;  %v564_v13 = vpack.c.bf16 (!%p189_p2), %v337_v11, %v336_v10  ;;  %v339_v15 = vld [vmem:[%s750_s3 + $0x28] sm:$0xff] (!%p189_p2)  ;;  %v340_v24 = vld [vmem:[%s750_s3 + $0x30] sm:$0xff] (!%p189_p2)  ;;  %v341_v25 = vld [vmem:[%s750_s3 + $0x38] sm:$0xff] (!%p189_p2) }
   0x9   : > { %557 = vmatprep.subr.bf16.mxu0 (!%p189_p2), %v607_v3  ;;  %562 = vmatpush3.bf16.msra.mxu1 (!%p189_p2), %v561_v9  ;;  %v567_v19 = vpack.c.bf16 (!%p189_p2), %v339_v15, %v338_v14  ;;  %v570_v31 = vpack.c.bf16 (!%p189_p2), %v341_v25, %v340_v24  ;;  %v342_v33 = vld [vmem:[%s750_s3 + $0x40] sm:$0xff] (!%p189_p2)  ;;  %v343_v34 = vld [vmem:[%s750_s3 + $0x48] sm:$0xff] (!%p189_p2)  ;;  %v344_v42 = vld [vmem:[%s750_s3 + $0x50] sm:$0xff] (!%p189_p2) }
   0xa   : > { %563 = vmatprep.subr.bf16.mxu1 (!%p189_p2), %v607_v3  ;;  %v573_v40 = vpack.c.bf16 (!%p189_p2), %v343_v34, %v342_v33  ;;  %v345_v43 = vld [vmem:[%s750_s3 + $0x58] sm:$0xff] (!%p189_p2)  ;;  %v346_v48 = vld [vmem:[%s750_s3 + $0x60] sm:$0xff] (!%p189_p2)  ;;  %v347_v49 = vld [vmem:[%s750_s3 + $0x68] sm:$0xff] (!%p189_p2) }
   0xb   : > { %v576_v47 = vpack.c.bf16 (!%p189_p2), %v345_v43, %v344_v42  ;;  %v579_v52 = vpack.c.bf16 (!%p189_p2), %v347_v49, %v346_v48  ;;  %v348_v59 = vld [vmem:[%s750_s3 + $0x70] sm:$0xff] (!%p189_p2)  ;;  %v349_v60 = vld [vmem:[%s750_s3 + $0x78] sm:$0xff] (!%p189_p2)  ;;  %v259_v62 = vld [vmem:[%s749_s2] sm:$0x1] (!%p189_p2) }
   0xc   : > { %559 = vmatpush3.bf16.msra.mxu0 (!%p189_p2), %v558_v12  ;;  %v582_v61 = vpack.c.bf16 (!%p189_p2), %v349_v60, %v348_v59 }
   0xd   : > { %s754_s28 = smov (!%p215_p3, %s480_s28), 15  ;;  %565 = vmatpush3.bf16.msra.mxu1 %v564_v13  ;;  %s756_s19 = smov (!%p220_p4, %s646_s19), 1 }
   0xe   : > { %s481_s16 = sshll.u32 %s754_s28, 3  ;;  %566 = vmatprep.subr.bf16.mxu1 %v607_v3  ;;  %s222_s25 = scalar_lea.vmem %s752_s5, %s756_s19 }
   0xf   : > { %s218_s21 = scalar_lea.vmem %s747_s0, %s481_s16 }
  0x10   : > { %v223_v16 = vld [vmem:[%s218_s21] sm:$0xff]  ;;  %v224_v17 = vld [vmem:[%s218_s21 + $0x8] sm:$0xff]  ;;  %v225_v18 = vld [vmem:[%s218_s21 + $0x10] sm:$0xff] }
  0x11   : > { %v226_v20 = vld [vmem:[%s218_s21 + $0x18] sm:$0xff]  ;;  %v232_v21 = vsel %vm231_vm1, %v223_v16, 0.0  ;;  %v233_v22 = vsel %vm231_vm1, %v224_v17, 0.0  ;;  %v235_v23 = vsel %vm231_vm1, %v225_v18, 0.0  ;;  %v227_v26 = vld [vmem:[%s218_s21 + $0x20] sm:$0xff]  ;;  %v228_v29 = vld [vmem:[%s218_s21 + $0x28] sm:$0xff]  ;;  %568 = vmatpush3.bf16.msra.mxu1 %v567_v19 }
  0x12   : > { %v234_v27 = vadd.f32 %v233_v22, %v232_v21  ;;  %v237_v28 = vsel %vm231_vm1, %v226_v20, 0.0  ;;  %v239_v32 = vsel %vm231_vm1, %v227_v26, 0.0  ;;  %569 = vmatprep.subr.bf16.mxu1 %v607_v3  ;;  %v229_v35 = vld [vmem:[%s218_s21 + $0x30] sm:$0xff]  ;;  %v241_v37 = vsel %vm231_vm1, %v228_v29, 0.0  ;;  %v230_v38 = vld [vmem:[%s218_s21 + $0x38] sm:$0xff] }
  0x13   : > { %v243_v41 = vsel %vm231_vm1, %v229_v35, 0.0  ;;  %v245_v45 = vsel %vm231_vm1, %v230_v38, 0.0 }
  0x14   : > { %v236_v30 = vadd.f32 %v235_v23, %v234_v27 }
  0x15   : > { %571 = vmatpush3.bf16.msra.mxu1 %v570_v31 }
  0x16   : > { %v238_v36 = vadd.f32 %v237_v28, %v236_v30  ;;  %572 = vmatprep.subr.bf16.mxu1 %v607_v3 }
  0x18   : > { %v240_v39 = vadd.f32 %v239_v32, %v238_v36 }
  0x19   : > { %574 = vmatpush3.bf16.msra.mxu1 %v573_v40 }
  0x1a   : > { %v242_v44 = vadd.f32 %v241_v37, %v240_v39  ;;  %575 = vmatprep.subr.bf16.mxu1 %v607_v3 }
  0x1c   : > { %v244_v46 = vadd.f32 %v243_v41, %v242_v44 }
  0x1d   : > { %577 = vmatpush3.bf16.msra.mxu1 %v576_v47 }
  0x1e   : > { %v246_v50 = vadd.f32 %v245_v45, %v244_v46  ;;  %578 = vmatprep.subr.bf16.mxu1 %v607_v3 }
  0x20   : > { %v247_v51 = vrot.slane %v246_v50, 4 }
  0x21   : > { %580 = vmatpush3.bf16.msra.mxu1 %v579_v52 }
  0x22   : > { %v248_v53 = vadd.f32 %v247_v51, %v246_v50  ;;  %581 = vmatprep.subr.bf16.mxu1 %v607_v3  ;;  %v350_v3 = vld [vmem:[%s751_s4] sm:$0x1] }
  0x24   : > { %v249_v54 = vrot.slane %v248_v53, 2 }
  0x25   : > { %583 = vmatpush3.bf16.msra.mxu1 %v582_v61 }
  0x26   : > { %v250_v55 = vadd.f32 %v249_v54, %v248_v53 }
  0x28   : > { %v251_v56 = vrot.slane %v250_v55, 1 }
  0x2a   : > { %v252_v57 = vadd.f32 %v251_v56, %v250_v55 }
  0x2c   : > { %v254_v58 = vmul.f32 0.015625, %v252_v57 }
  0x2e   : > { %517 = vmatmul.mubr.msk.f32.vlgmr.msra.gmra.mrb[0].mxu0 %vm231_vm1, %v254_v58 }
 0x101   : > { %v329_v63 = vpop.f32.mrb[0].mxu0 }
 0x102   : > { %v330_v0 = vadd.f32 %v329_v63, %v259_v62  ;;  %v518_v1 = vpop.f32.mrb[1].mxu0 }
 0x104   : > { %v333_v2 = vmax.f32 %v330_v0, 0.0 }
 0x106   : > { %552 = vmatmul.mubr.f32.vlgmr.msra.gmra.mrb[0].mxu1 %v333_v2 }
 0x1d9   : > { %v417_v4 = vpop.f32.mrb[0].mxu1 }
 0x1da   : > { %v418_v5 = vadd.f32 %v417_v4, %v350_v3  ;;  %v553_v6 = vpop.f32.mrb[1].mxu1 }
 0x1dc   : > { %v483_v7 = vmul.f32 -1.442695, %v418_v5 }
 0x1de   : > { %595 = vpow2.f32 %v483_v7 }
 0x1e8   : > { %v596_v8 = vpop.eup %595 }
 0x1e9   : > { %v424_v9 = vadd.f32 1.0, %v596_v8 }
 0x1eb   : > { %597 = vrcp.f32 %v424_v9 }
 0x1f5   : > { %v598_v10 = vpop.eup %597 }
 0x1f6   : > { %427 = vst [vmem:[%s222_s25] sm:$0x1] %v598_v10 }
 0x1f7 PF: > { %s15_s18 = sadd.s32 1, %s605_s18  }
 0x1f8   : > { %p12_p5 = scmp.ge.s32.totalorder %s15_s18, 4  }
 0x1fa   :  { %14 = sbr.rel (!%p12_p5) target bundleno = 1 (0x1), region = 70 }

// kernel: inception_forward.7
= control target key start
LH: loop header
LB: loop body
LE: loop exit
PB: predicated region body
PF: predicated region fallthrough
CT: control target
= control target key end

     0   :  { %10 = vsyncpa [#allocation3], 0  ;;  %s743_s0 = inlined_call_operand.vmem [shape: f32[128,128], index: 0, kind: input, shape index: {}]   ;;  %s744_s1 = inlined_call_operand.vmem [shape: f32[1,128], index: 1, kind: input, shape index: {}]   ;;  %s745_s2 = inlined_call_operand.vmem [shape: f32[1,128], index: 2, kind: input, shape index: {}]   ;;  %s746_s3 = inlined_call_operand.vmem [shape: f32[128,128], index: 3, kind: input, shape index: {}]   ;;  %s747_s4 = inlined_call_operand.vmem [shape: f32[2,1,128], index: 4, kind: input, shape index: {}]   ;;  %s748_s5 = inlined_call_operand.hbm [shape: f32[128,128], index: 5, kind: output, shape index: {}]  }
   0x1   :  { %12 = vsyncpa [#allocation3 + $0x1], 0  ;;  %s600_s18 = smov 0   ;;  %s602_s19 = smov 0  }
   0x2   :  { %s604_s20 = smov 0   ;;  %s606_s21 = smov 0  }
   0x3 LB: > { %s621_s22 = sadd.s32 4294967295, %s565_s21   ;;  %s444_s23 = sadd.s32 4294967294, %s565_s21   ;;  %s565_s21 = sphi %s606_s21, %s754_s21   ;;  %s561_s20 = sphi %s604_s20, %s753_s20   ;;  %s557_s19 = sphi %s602_s19, %s752_s19   ;;  %s553_s18 = sphi %s600_s18, %s751_s18  }
   0x4   : > { %s625_s24 = sadd.s32 1, %s565_s21   ;;  %s145_s25 = sadd.s32 1, %s561_s20 }
   0x5   : > { %s142_s26 = ssub.s32 %s565_s21, %s625_s24  ;;  %p155_p0 = scmp.ne.s32.totalorder %s561_s20, %s557_s19 }
   0x6   : > { %p143_p1 = scmp.eq.s32.totalorder %s142_s26, 0  ;;  %p156_p2 = scmp.eq.s32.totalorder %s621_s22, 1 }
   0x7   : > { %p161_p3 = scmp.ne.s32.totalorder %s557_s19, %s553_s18  ;;  %p162_p4 = scmp.eq.s32.totalorder %s444_s23, 1 }
   0x8   : > { %s636_s27 = scalar_select %p143_p1, %s561_s20, %s145_s25  }
   0x9   : > { %p638_p5 = por %p156_p2, %p155_p0  ;;  %p642_p6 = por %p162_p4, %p161_p3 }
   0xa   : > { %p447_p7 = scmp.ge.s32.totalorder %s565_s21, 1  ;;  %p210_p8 = scmp.lt.s32.totalorder %s565_s21, 3 }
   0xc   : > { %p211_p9 = pnand %p447_p7, %p210_p8 }
   0xd   : > { %s449_s30 = sshll.u32 (!%p211_p9), %s621_s22, 3  ;;  %p258_p11 = scmp.lt.s32.totalorder (!%p211_p9), %s621_s22, 1  ;;  %v453_v0 = vld [vmem:[%s744_s1] ss:$0 sm:$0xff] (!%p211_p9) }
   0xe   : > { %214 = sbr.rel (%p211_p9) target bundleno = 57 (0x39), region = 40  ;;  %p247_p10 = scmp.lt.s32.totalorder (!%p211_p9), %s449_s30, 15  ;;  %v454_v1 = vld [vmem:[%s745_s2] ss:$0 sm:$0xff] (!%p211_p9) }
   0xf   : > { %s243_s23 = sand.u32 (!%p211_p9), 1, %s557_s19   ;;  %s461_s9 = sshll.u32 (!%p211_p9), %s621_s22, 10 }
  0x10   : > { %s702_s13 = scalar_lea.sflag (!%p211_p9), [#allocation3], %s243_s23  ;;  %s567_s14 = smov (!%p211_p9), [#allocation2]  }
  0x15   : > { %s756_s30 = smov (!%p247_p10, %s449_s30), 15 }
  0x16   : > { %s259_s6 = scalar_select %p258_p11, %s621_s22, 1 }
  0x17   : > { %s450_s7 = sshll.u32 %s756_s30, 3 }
  0x18   : > { %s657_s12 = scalar_lea.vmem %s743_s0, %s450_s7  ;;  %s662_s15 = scalar_lea.vmem %s746_s3, %s450_s7 }
  0x19   : > { %s260_s30 = scalar_lea.vmem %s747_s4, %s259_s6  ;;  %v262_v2 = vld [vmem:[%s657_s12] sm:$0xff]  ;;  %v263_v4 = vld [vmem:[%s657_s12 + $0x8] sm:$0xff]  ;;  %v264_v9 = vld [vmem:[%s657_s12 + $0x10] sm:$0xff]  ;;  %s681_s6 = sshll.u32 %s243_s23, 6 }
  0x1a   : > { %v308_v3 = vld [vmem:[%s662_s15] sm:$0xff]  ;;  %v277_v5 = vmul.f32 %v453_v0, %v262_v2  ;;  %v278_v7 = vmul.f32 %v453_v0, %v263_v4  ;;  %v309_v8 = vld [vmem:[%s662_s15 + $0x8] sm:$0xff]  ;;  %v279_v12 = vmul.f32 %v453_v0, %v264_v9  ;;  %v310_v13 = vld [vmem:[%s662_s15 + $0x10] sm:$0xff]  ;;  %s245_s7 = scalar_lea.vmem [#allocation2], %s681_s6 }
  0x1b   : > { %v455_v6 = vld [vmem:[%s260_s30] ss:$0 sm:$0xff]  ;;  %v265_v14 = vld [vmem:[%s657_s12 + $0x18] sm:$0xff]  ;;  %v267_v22 = vld [vmem:[%s657_s12 + $0x28] sm:$0xff]  ;;  %s361_s8 = sshll.u32 %s245_s7, 4  ;;  %s693_s8 = int_to_ptr.vmem [resolvable:$true] %s361_s8 }
  0x1c   : > { %v323_v10 = vmul.f32 %v455_v6, %v308_v3  ;;  %v324_v11 = vmul.f32 %v455_v6, %v309_v8  ;;  %v311_v15 = vld [vmem:[%s662_s15 + $0x18] sm:$0xff]  ;;  %v292_v16 = vadd.f32 %v454_v1, %v277_v5  ;;  %v293_v17 = vadd.f32 %v454_v1, %v278_v7  ;;  %v266_v20 = vld [vmem:[%s657_s12 + $0x20] sm:$0xff]  ;;  %v313_v27 = vld [vmem:[%s662_s15 + $0x28] sm:$0xff]  ;;  %s503_s22 = scalar_lea.vmem %s693_s8, 1024 }
  0x1d   : > { %v325_v18 = vmul.f32 %v455_v6, %v310_v13  ;;  %v280_v19 = vmul.f32 %v453_v0, %v265_v14  ;;  %v312_v21 = vld [vmem:[%s662_s15 + $0x20] sm:$0xff]  ;;  %v294_v23 = vadd.f32 %v454_v1, %v279_v12  ;;  %v326_v24 = vmul.f32 %v455_v6, %v311_v15  ;;  %v268_v28 = vld [vmem:[%s657_s12 + $0x30] sm:$0xff]  ;;  %v269_v38 = vld [vmem:[%s657_s12 + $0x38] sm:$0xff]  ;;  %s698_s12 = scalar_lea.hbm %s748_s5, %s461_s9  ;;  %p504_p12 = scmp.ne.s32.totalorder %s693_s8, %s503_s22 }
  0x1e   : > { %v281_v25 = vmul.f32 %v453_v0, %v266_v20  ;;  %v327_v26 = vmul.f32 %v455_v6, %v312_v21  ;;  %v300_v29 = vmax.f32 %v292_v16, 0.0  ;;  %v301_v30 = vmax.f32 %v293_v17, 0.0  ;;  %v314_v33 = vld [vmem:[%s662_s15 + $0x30] sm:$0xff]  ;;  %v315_v47 = vld [vmem:[%s662_s15 + $0x38] sm:$0xff]  ;;  %s507_s15 = sshll.u32 %s567_s14, 4  ;;  %s508_s15 = int_to_ptr.vmem [resolvable:$false] %s507_s15 }
  0x1f   : > { %v295_v31 = vadd.f32 %v454_v1, %v280_v19  ;;  %v282_v32 = vmul.f32 %v453_v0, %v267_v22  ;;  %v302_v34 = vmax.f32 %v294_v23, 0.0  ;;  %v328_v36 = vmul.f32 %v455_v6, %v313_v27  ;;  %p505_p13 = pnand %p504_p12, %p638_p5  ;;  %s509_s16 = scalar_lea.vmem %s508_s15, 2048 }
  0x20   : > { %v296_v35 = vadd.f32 %v454_v1, %v281_v25  ;;  %v283_v37 = vmul.f32 %v453_v0, %v268_v28  ;;  %v331_v39 = vadd.f32 %v323_v10, %v300_v29  ;;  %v332_v40 = vadd.f32 %v324_v11, %v301_v30  ;;  %p510_p1 = scmp.lt.s32.totalorder %s693_s8, %s508_s15  ;;  %p511_p2 = scmp.lt.s32.totalorder %s509_s16, %s503_s22 }
  0x21   : > { %v303_v41 = vmax.f32 %v295_v31, 0.0  ;;  %v297_v42 = vadd.f32 %v454_v1, %v282_v32  ;;  %v333_v43 = vadd.f32 %v325_v18, %v302_v34  ;;  %v329_v46 = vmul.f32 %v455_v6, %v314_v33  ;;  %p506_p0 = pneg %p505_p13 }
  0x22   : > { %v304_v44 = vmax.f32 %v296_v35, 0.0  ;;  %v298_v45 = vadd.f32 %v454_v1, %v283_v37  ;;  %339 = vst [vmem:[%s245_s7] sm:$0xff] %v331_v39  ;;  %340 = vst [vmem:[%s245_s7 + $0x8] sm:$0xff] %v332_v40  ;;  %v284_v50 = vmul.f32 %v453_v0, %v269_v38  ;;  %v330_v55 = vmul.f32 %v455_v6, %v315_v47  ;;  %p512_p3 = por %p511_p2, %p510_p1 }
  0x23   : > { %v334_v48 = vadd.f32 %v326_v24, %v303_v41  ;;  %v305_v49 = vmax.f32 %v297_v42, 0.0  ;;  %341 = vst [vmem:[%s245_s7 + $0x10] sm:$0xff] %v333_v43 }
  0x24   : > { %v335_v51 = vadd.f32 %v327_v26, %v304_v44  ;;  %v306_v52 = vmax.f32 %v298_v45, 0.0  ;;  %v299_v54 = vadd.f32 %v454_v1, %v284_v50  ;;  %p513_p4 = pnand %p512_p3, %p506_p0 }
  0x25   : > { %342 = vst [vmem:[%s245_s7 + $0x18] sm:$0xff] %v334_v48  ;;  %v336_v53 = vadd.f32 %v328_v36, %v305_v49 }
  0x26   : > { %343 = vst [vmem:[%s245_s7 + $0x20] sm:$0xff] %v335_v51  ;;  %v337_v56 = vadd.f32 %v329_v46, %v306_v52  ;;  %v307_v57 = vmax.f32 %v299_v54, 0.0 }
  0x27   : > { %344 = vst [vmem:[%s245_s7 + $0x28] sm:$0xff] %v336_v53 }
  0x28   : > { %345 = vst [vmem:[%s245_s7 + $0x30] sm:$0xff] %v337_v56  ;;  %v338_v58 = vadd.f32 %v330_v55, %v307_v57 }
  0x2a   : > { %346 = vst [vmem:[%s245_s7 + $0x38] sm:$0xff] %v338_v58 }
  0x2b   : > { %516 = shalt.err (!%p513_p4)
}
  0x2c   : > { %s517_s17 = scalar_lea.hbm %s698_s12, 1024  ;;  %s521_s26 = scalar_lea.hbm %s748_s5, 2048 }
  0x2d   : > { %p518_p7 = scmp.ne.s32.totalorder %s698_s12, %s517_s17  ;;  %p522_p10 = scmp.lt.u32.totalorder %s698_s12, %s748_s5 }
  0x2e   : > { %p523_p11 = scmp.lt.u32.totalorder %s521_s26, %s517_s17  ;;  %p525_p13 = scmp.lt.u32.totalorder %s517_s17, %s698_s12 }
  0x2f   : > { %p519_p8 = pnand %p518_p7, %p638_p5 }
  0x30   : > { %p524_p12 = por %p523_p11, %p522_p10 }
  0x31   : > { %p520_p9 = pneg %p519_p8 }
  0x32   : > { %p526_p0 = por %p525_p13, %p524_p12 }
  0x34   : > { %p527_p1 = pnand %p526_p0, %p520_p9 }
  0x36   : > { %530 = shalt.err (!%p527_p1)
}
  0x37   : > { %s568_s7 = smov 128   ;;  %s569_s9 = smov 8  }
  0x38   : > { %462 = dma.vmem_to_hbm [thread:$0]  (%p638_p5), %s693_s8, 1024, %s698_s12, %s702_s13, %s568_s7, %s568_s7, %s569_s9  }
  0x39 PF: > { %p468_p2 = scmp.ge.s32.totalorder %s565_s21, 2  ;;  %s376_s10 = sand.u32 1, %s553_s18  }
  0x3a   : > { %s377_s11 = scalar_lea.sflag [#allocation3], %s376_s10 }
  0x3b   : > { %p465_p3 = pnand %p468_p2, %p642_p6 }
  0x3d   : > { %548 = dma.done.wait (!%p465_p3), %s377_s11, 1024  }
  0x3e   : > { %550 = vsyncadd (!%p465_p3), %s377_s11, 4294966272  ;;  %p15_p4 = scmp.ge.s32.totalorder %s625_s24, 4   ;;  %s751_s18 = smov %s557_s19 }
  0x3f   : > { %s752_s19 = smov %s561_s20  ;;  %s753_s20 = smov %s636_s27 }
  0x40   : > { %s754_s21 = smov %s625_s24  ;;  %17 = sbr.rel (!%p15_p4) target bundleno = 3 (0x3), region = 81 }
  0x47   :  { %382 = vsyncpa [#allocation3], 1 }
  0x48   :  { %384 = vsyncpa [#allocation3 + $0x1], 1 }

// kernel: inception_forward.5
= control target key start
LH: loop header
LB: loop body
LE: loop exit
PB: predicated region body
PF: predicated region fallthrough
CT: control target
= control target key end

     0   :  { %s801_s24 = smov 0   ;;  %s866_s0 = inlined_call_operand.vmem [shape: bf16[128,128], index: 0, kind: input, shape index: {}]   ;;  %s867_s1 = inlined_call_operand.vmem [shape: f32[1,128], index: 1, kind: input, shape index: {}]   ;;  %s868_s2 = inlined_call_operand.vmem [shape: f32[1,128], index: 2, kind: input, shape index: {}]   ;;  %s869_s3 = inlined_call_operand.vmem [shape: bf16[128,128], index: 3, kind: input, shape index: {}]   ;;  %s870_s4 = inlined_call_operand.vmem [shape: f32[1,128], index: 4, kind: input, shape index: {}]   ;;  %s871_s5 = inlined_call_operand.vmem [shape: f32[128,128], index: 5, kind: output, shape index: {0}]   ;;  %s872_s6 = inlined_call_operand.vmem [shape: f32[2,1,128], index: 6, kind: output, shape index: {1}]   ;;  %s873_s7 = inlined_call_operand.vmem [shape: f32[2,1,128], index: 7, kind: output, shape index: {2}]  }
   0x1 LB: > { %s807_s25 = sadd.s32 4294967295, %s759_s24   ;;  %p648_p0 = scmp.ge.s32.totalorder %s759_s24, 1  ;;  %s759_s24 = sphi %s801_s24, %s18_s24  }
   0x2   : > { %p243_p1 = scmp.lt.s32.totalorder %s759_s24, 3 }
   0x4   : > { %p244_p2 = pnand %p648_p0, %p243_p1 }
   0x5   : > { %v745_v0 = vld [vmem:[%s869_s3] sm:$0xff] (!%p244_p2)   ;;  %s649_s28 = sshll.u32 (!%p244_p2), %s807_s25, 3  ;;  %v746_v1 = vld [vmem:[%s869_s3 + $0x8] sm:$0xff] (!%p244_p2)   ;;  %v747_v2 = vld [vmem:[%s869_s3 + $0x10] sm:$0xff] (!%p244_p2)   ;;  %p293_p4 = scmp.lt.s32.totalorder (!%p244_p2), %s807_s25, 1 }
   0x6   : > { %247 = sbr.rel (%p244_p2) target bundleno = 285 (0x11d), region = 40  ;;  %p282_p3 = scmp.lt.s32.totalorder (!%p244_p2), %s649_s28, 15  ;;  %697 = vmatprep.subr.bf16.mxu0 (!%p244_p2), %v745_v0  ;;  %721 = vmatprep.subr.bf16.mxu1 (!%p244_p2), %v745_v0  ;;  %v748_v3 = vld [vmem:[%s869_s3 + $0x18] sm:$0xff] (!%p244_p2)   ;;  %v653_v5 = vld [vmem:[%s867_s1] ss:$0 sm:$0xff] (!%p244_p2)  ;;  %v750_v29 = vld [vmem:[%s869_s3 + $0x28] sm:$0xff] (!%p244_p2)  }
   0x7   : > { %698 = vmatpush3.bf16.msra.mxu0 (!%p244_p2), %v745_v0  ;;  %729 = vmatpush3.bf16.msra.mxu1 (!%p244_p2), %v745_v0  ;;  %v654_v9 = vld [vmem:[%s868_s2] ss:$0 sm:$0xff] (!%p244_p2)  ;;  %v751_v38 = vld [vmem:[%s869_s3 + $0x30] sm:$0xff] (!%p244_p2)   ;;  %v752_v43 = vld [vmem:[%s869_s3 + $0x38] sm:$0xff] (!%p244_p2)  }
   0x8   : > { %699 = vmatprep.subr.bf16.mxu0 (!%p244_p2), %v746_v1  ;;  %722 = vmatprep.subr.bf16.mxu1 (!%p244_p2), %v746_v1  ;;  %v749_v16 = vld [vmem:[%s869_s3 + $0x20] sm:$0xff] (!%p244_p2)  }
   0x9   : > { %v655_v50 = vld [vmem:[%s870_s4] ss:$0 sm:$0xff] (!%p244_p2) }
   0xb   : > { %700 = vmatpush3.bf16.msra.mxu0 (!%p244_p2), %v746_v1  ;;  %730 = vmatpush3.bf16.msra.mxu1 (!%p244_p2), %v746_v1 }
   0xc   : > { %701 = vmatprep.subr.bf16.mxu0 (!%p244_p2), %v747_v2  ;;  %723 = vmatprep.subr.bf16.mxu1 (!%p244_p2), %v747_v2 }
   0xd   : > { %s875_s28 = smov (!%p282_p3, %s649_s28), 15  ;;  %s877_s25 = smov (!%p293_p4, %s807_s25), 1 }
   0xe   : > { %s650_s10 = sshll.u32 %s875_s28, 2  ;;  %s652_s8 = sshll.u32 %s875_s28, 3 }
   0xf   : > { %s285_s13 = scalar_lea.vmem %s866_s0, %s650_s10  ;;  %702 = vmatpush3.bf16.msra.mxu0 %v747_v2  ;;  %731 = vmatpush3.bf16.msra.mxu1 %v747_v2  ;;  %s295_s15 = scalar_lea.vmem %s872_s6, %s877_s25 }
  0x10   : > { %v667_v4 = vld [vmem:[%s285_s13] sm:$0xff]   ;;  %v683_v8 = vld [vmem:[%s285_s13 + $0x10] sm:$0xff]   ;;  %v682_v10 = vld [vmem:[%s285_s13 + $0x8] sm:$0xff]   ;;  %703 = vmatprep.subr.bf16.mxu0 %v748_v3  ;;  %724 = vmatprep.subr.bf16.mxu1 %v748_v3  ;;  %s298_s18 = scalar_lea.vmem %s873_s7, %s877_s25 }
  0x11   : > { %v668_v6 = vunpack.c.l.bf16 %v667_v4  ;;  %v669_v7 = vunpack.c.h.bf16 %v667_v4  ;;  %v676_v11 = vunpack.c.l.bf16 %v683_v8  ;;  %v677_v12 = vunpack.c.h.bf16 %v683_v8  ;;  %v684_v15 = vld [vmem:[%s285_s13 + $0x18] sm:$0xff]   ;;  %s291_s13 = scalar_lea.vmem %s871_s5, %s652_s8 }
  0x12   : > { %v672_v20 = vunpack.c.l.bf16 %v682_v10  ;;  %v673_v22 = vunpack.c.h.bf16 %v682_v10  ;;  %v680_v24 = vunpack.c.l.bf16 %v684_v15  ;;  %v681_v25 = vunpack.c.h.bf16 %v684_v15 }
  0x13   : > { %v323_v13 = vmul.f32 %v668_v6, %v653_v5  ;;  %v324_v14 = vmul.f32 %v669_v7, %v653_v5  ;;  %v327_v17 = vmul.f32 %v676_v11, %v653_v5  ;;  %v328_v21 = vmul.f32 %v677_v12, %v653_v5  ;;  %704 = vmatpush3.bf16.msra.mxu0 %v748_v3 }
  0x14   : > { %732 = vmatpush3.bf16.msra.mxu1 %v748_v3  ;;  %705 = vmatprep.subr.bf16.mxu0 %v749_v16  ;;  %v325_v33 = vmul.f32 %v672_v20, %v653_v5  ;;  %v326_v34 = vmul.f32 %v673_v22, %v653_v5  ;;  %v329_v35 = vmul.f32 %v680_v24, %v653_v5 }
  0x15   : > { %v338_v18 = vadd.f32 %v654_v9, %v323_v13  ;;  %v339_v19 = vadd.f32 %v654_v9, %v324_v14  ;;  %v342_v23 = vadd.f32 %v654_v9, %v327_v17  ;;  %v343_v28 = vadd.f32 %v654_v9, %v328_v21  ;;  %725 = vmatprep.subr.bf16.mxu1 %v749_v16 }
  0x16   : > { %v330_v36 = vmul.f32 %v681_v25, %v653_v5  ;;  %v340_v39 = vadd.f32 %v654_v9, %v325_v33  ;;  %v341_v40 = vadd.f32 %v654_v9, %v326_v34  ;;  %v344_v41 = vadd.f32 %v654_v9, %v329_v35 }
  0x17   : > { %v346_v26 = vmax.f32 %v338_v18, 0.0  ;;  %v347_v27 = vmax.f32 %v339_v19, 0.0  ;;  %v350_v30 = vmax.f32 %v342_v23, 0.0  ;;  %v351_v32 = vmax.f32 %v343_v28, 0.0  ;;  %706 = vmatpush3.bf16.msra.mxu0 %v749_v16 }
  0x18   : > { %733 = vmatpush3.bf16.msra.mxu1 %v749_v16  ;;  %707 = vmatprep.subr.bf16.mxu0 %v750_v29  ;;  %v345_v42 = vadd.f32 %v654_v9, %v330_v36  ;;  %v348_v44 = vmax.f32 %v340_v39, 0.0  ;;  %v349_v45 = vmax.f32 %v341_v40, 0.0  ;;  %v352_v46 = vmax.f32 %v344_v41, 0.0 }
  0x19   : > { %v354_v31 = vpack.c.bf16 %v347_v27, %v346_v26  ;;  %v356_v37 = vpack.c.bf16 %v351_v32, %v350_v30  ;;  %726 = vmatprep.subr.bf16.mxu1 %v750_v29 }
  0x1a   : > { %v353_v47 = vmax.f32 %v345_v42, 0.0  ;;  %v355_v48 = vpack.c.bf16 %v349_v45, %v348_v44 }
  0x1b   : > { %713 = vmatprep.mubr.bf16.mxu0 %v354_v31  ;;  %717 = vmatprep.mubr.bf16.mxu1 %v356_v37 }
  0x1c   : > { %708 = vmatpush3.bf16.msra.mxu0 %v750_v29  ;;  %734 = vmatpush3.bf16.msra.mxu1 %v750_v29  ;;  %v357_v49 = vpack.c.bf16 %v353_v47, %v352_v46 }
  0x1d   : > { %709 = vmatprep.subr.bf16.mxu0 %v751_v38  ;;  %727 = vmatprep.subr.bf16.mxu1 %v751_v38 }
  0x20   : > { %710 = vmatpush3.bf16.msra.mxu0 %v751_v38  ;;  %735 = vmatpush3.bf16.msra.mxu1 %v751_v38 }
  0x21   : > { %711 = vmatprep.subr.bf16.mxu0 %v752_v43  ;;  %728 = vmatprep.subr.bf16.mxu1 %v752_v43 }
  0x24   : > { %712 = vmatpush3.bf16.msra.mxu0 %v752_v43  ;;  %736 = vmatpush3.bf16.msra.mxu1 %v752_v43 }
  0x27   : > { %714 = vmatmul.mubr.bf16.vlgmr.msra.gmra.mrb[0].mxu0 %v355_v48  ;;  %718 = vmatmul.mubr.bf16.vlgmr.msra.gmra.mrb[0].mxu1 %v357_v49 }
  0xfa   : > { %v715_v51 = vpop.f32.mrb[0].mxu0  ;;  %v719_v52 = vpop.f32.mrb[0].mxu1 }
  0xfb   : > { %v472_v53 = vadd.f32 %v715_v51, %v655_v50  ;;  %v463_v54 = vpop.f32.mrb[1].mxu0  ;;  %v488_v55 = vadd.f32 %v719_v52, %v655_v50  ;;  %v479_v56 = vpop.f32.mrb[1].mxu1 }
  0xfc   : > { %v464_v57 = vadd.f32 %v655_v50, %v463_v54  ;;  %v716_v58 = vpop.f32.mrb[2].mxu0  ;;  %v480_v59 = vadd.f32 %v655_v50, %v479_v56  ;;  %v720_v60 = vpop.f32.mrb[2].mxu1 }
  0xfd   : > { %496 = vst [vmem:[%s291_s13 + $0x10] sm:$0xff] %v472_v53  ;;  %v475_v61 = vadd.f32 %v716_v58, %v655_v50  ;;  %v466_v62 = vpop.f32.mrb[3].mxu0  ;;  %500 = vst [vmem:[%s291_s13 + $0x30] sm:$0xff] %v488_v55  ;;  %v491_v63 = vadd.f32 %v720_v60, %v655_v50  ;;  %v482_v0 = vpop.f32.mrb[3].mxu1  ;;  %v518_v6 = vmul.f32 %v472_v53, %v472_v53 }
  0xfe   : > { %494 = vst [vmem:[%s291_s13] sm:$0xff] %v464_v57  ;;  %v467_v1 = vadd.f32 %v655_v50, %v466_v62  ;;  %498 = vst [vmem:[%s291_s13 + $0x20] sm:$0xff] %v480_v59  ;;  %v483_v2 = vadd.f32 %v655_v50, %v482_v0  ;;  %v516_v3 = vmul.f32 %v464_v57, %v464_v57 }
  0xff   : > { %497 = vst [vmem:[%s291_s13 + $0x18] sm:$0xff] %v475_v61  ;;  %501 = vst [vmem:[%s291_s13 + $0x38] sm:$0xff] %v491_v63  ;;  %v519_v9 = vmul.f32 %v475_v61, %v475_v61  ;;  %v520_v12 = vmul.f32 %v480_v59, %v480_v59  ;;  %v522_v18 = vmul.f32 %v488_v55, %v488_v55 }
 0x100   : > { %495 = vst [vmem:[%s291_s13 + $0x8] sm:$0xff] %v467_v1  ;;  %v502_v4 = vadd.f32 %v467_v1, %v464_v57  ;;  %v517_v5 = vmul.f32 %v467_v1, %v467_v1  ;;  %499 = vst [vmem:[%s291_s13 + $0x28] sm:$0xff] %v483_v2  ;;  %v521_v17 = vmul.f32 %v483_v2, %v483_v2 }
 0x101   : > { %v523_v21 = vmul.f32 %v491_v63, %v491_v63 }
 0x102   : > { %v503_v7 = vadd.f32 %v502_v4, %v472_v53  ;;  %v524_v8 = vadd.f32 %v517_v5, %v516_v3 }
 0x104   : > { %v525_v10 = vadd.f32 %v524_v8, %v518_v6  ;;  %v504_v11 = vadd.f32 %v503_v7, %v475_v61 }
 0x106   : > { %v505_v13 = vadd.f32 %v504_v11, %v480_v59  ;;  %v526_v14 = vadd.f32 %v525_v10, %v519_v9 }
 0x108   : > { %v527_v15 = vadd.f32 %v526_v14, %v520_v12  ;;  %v506_v16 = vadd.f32 %v505_v13, %v483_v2 }
 0x10a   : > { %v507_v19 = vadd.f32 %v506_v16, %v488_v55  ;;  %v528_v20 = vadd.f32 %v527_v15, %v521_v17 }
 0x10c   : > { %v508_v22 = vadd.f32 %v507_v19, %v491_v63  ;;  %v529_v23 = vadd.f32 %v528_v20, %v522_v18 }
 0x10e   : > { %v509_v24 = vrot.slane %v508_v22, 4  ;;  %v530_v25 = vadd.f32 %v529_v23, %v523_v21 }
 0x110   : > { %v510_v26 = vadd.f32 %v509_v24, %v508_v22  ;;  %v531_v27 = vrot.slane %v530_v25, 4 }
 0x112   : > { %v511_v28 = vrot.slane %v510_v26, 2  ;;  %v532_v29 = vadd.f32 %v531_v27, %v530_v25 }
 0x114   : > { %v512_v30 = vadd.f32 %v511_v28, %v510_v26  ;;  %v533_v31 = vrot.slane %v532_v29, 2 }
 0x116   : > { %v513_v32 = vrot.slane %v512_v30, 1  ;;  %v534_v33 = vadd.f32 %v533_v31, %v532_v29 }
 0x118   : > { %v514_v34 = vadd.f32 %v513_v32, %v512_v30  ;;  %v535_v35 = vrot.slane %v534_v33, 1 }
 0x11a   : > { %515 = vst [vmem:[%s295_s15] sm:$0x1] %v514_v34  ;;  %v536_v36 = vadd.f32 %v535_v35, %v534_v33 }
 0x11c   : > { %537 = vst [vmem:[%s298_s18] sm:$0x1] %v536_v36 }
 0x11d PF: > { %s18_s24 = sadd.s32 1, %s759_s24  }
 0x11e   : > { %p15_p5 = scmp.ge.s32.totalorder %s18_s24, 4  }
 0x120   :  { %17 = sbr.rel (!%p15_p5) target bundleno = 1 (0x1), region = 94 }

// kernel: inception_forward.4
= control target key start
LH: loop header
LB: loop body
LE: loop exit
PB: predicated region body
PF: predicated region fallthrough
CT: control target
= control target key end

     0   :  { %s4358_s18 = smov 0   ;;  %s5009_s0 = inlined_call_operand.vmem [shape: f32[2,12,12,32], index: 0, kind: input, shape index: {}]   ;;  %s5010_s1 = inlined_call_operand.vmem [shape: bf16[800,128], index: 1, kind: input, shape index: {}]   ;;  %s5011_s2 = inlined_call_operand.vmem [shape: f32[1,128], index: 2, kind: input, shape index: {}]   ;;  %s5012_s3 = inlined_call_operand.vmem [shape: bf16[128,128], index: 3, kind: output, shape index: {0}]   ;;  %s5013_s4 = inlined_call_operand.vmem [shape: f32[2,1,128], index: 4, kind: output, shape index: {1}]   ;;  %s5014_s5 = inlined_call_operand.vmem [shape: f32[2,1,128], index: 5, kind: output, shape index: {2}]  }
   0x1 LB: > { %s4364_s19 = sadd.s32 4294967295, %s4326_s18   ;;  %p3259_p0 = scmp.ge.s32.totalorder %s4326_s18, 1  ;;  %s4326_s18 = sphi %s4358_s18, %s16_s18  }
   0x2   : > { %p192_p1 = scmp.lt.s32.totalorder %s4326_s18, 3 }
   0x4   : > { %p193_p2 = pnand %p3259_p0, %p192_p1 }
   0x5   : > { %v4270_v0 = vld [vmem:[%s5010_s1 + $0x10] sm:$0xff] (!%p193_p2)   ;;  %p226_p3 = scmp.lt.s32.totalorder (!%p193_p2), %s4364_s19, 1  ;;  %v4375_v1 = vld [vmem:[%s5010_s1 + $0xc0] sm:$0xff] (!%p193_p2)   ;;  %v4272_v2 = vld [vmem:[%s5010_s1 + $0x18] sm:$0xff] (!%p193_p2)   ;;  %vm288_vm0 = vcmask (!%p193_p2), 261120   ;;  %s3261_s16 = sshll.u32 (!%p193_p2), %s4364_s19, 3 }
   0x6   : > { %196 = sbr.rel (%p193_p2) target bundleno = 460 (0x1cc), region = 32  ;;  %3765 = vmatprep.subr.bf16.mxu1 (!%p193_p2), %v4270_v0  ;;  %3909 = vmatprep.subr.bf16.mxu0 (!%p193_p2), %v4375_v1  ;;  %v4387_v3 = vld [vmem:[%s5010_s1 + $0xc8] sm:$0xff] (!%p193_p2)   ;;  %v4274_v4 = vld [vmem:[%s5010_s1] sm:$0xff] (!%p193_p2)   ;;  %v4275_v5 = vld [vmem:[%s5010_s1 + $0xd0] sm:$0xff] (!%p193_p2)   ;;  %p232_p4 = scmp.lt.s32.totalorder (!%p193_p2), %s3261_s16, 15 }
   0x7   : > { %3766 = vmatpush3.bf16.msra.mxu1 (!%p193_p2), %v4270_v0  ;;  %3910 = vmatpush3.bf16.msra.mxu0 (!%p193_p2), %v4375_v1  ;;  %v4276_v13 = vld [vmem:[%s5010_s1 + $0xd8] sm:$0xff] (!%p193_p2)   ;;  %v4277_v26 = vld [vmem:[%s5010_s1 + $0x8] sm:$0xff] (!%p193_p2)   ;;  %v4278_v32 = vld [vmem:[%s5010_s1 + $0xe0] sm:$0xff] (!%p193_p2)  }
   0x8   : > { %3767 = vmatprep.subr.bf16.mxu1 (!%p193_p2), %v4272_v2  ;;  %3911 = vmatprep.subr.bf16.mxu0 (!%p193_p2), %v4387_v3  ;;  %v4279_v38 = vld [vmem:[%s5010_s1 + $0x20] sm:$0xff] (!%p193_p2)   ;;  %v4280_v48 = vld [vmem:[%s5010_s1 + $0xe8] sm:$0xff] (!%p193_p2)   ;;  %v4282_v61 = vld [vmem:[%s5010_s1 + $0xf0] sm:$0xff] (!%p193_p2)  }
   0x9   : > { %v4281_v55 = vld [vmem:[%s5010_s1 + $0x28] sm:$0xff] (!%p193_p2)  }
   0xb   : > { %3768 = vmatpush3.bf16.msra.mxu1 (!%p193_p2), %v4272_v2  ;;  %3912 = vmatpush3.bf16.msra.mxu0 (!%p193_p2), %v4387_v3 }
   0xc   : > { %3777 = vmatprep.subr.bf16.mxu1 (!%p193_p2), %v4274_v4  ;;  %3921 = vmatprep.subr.bf16.mxu0 (!%p193_p2), %v4275_v5 }
   0xd   : > { %s4381_s26 = scalar_select %p226_p3, %s4364_s19, 1 }
   0xe   : > { %s5019_s16 = smov (!%p232_p4, %s3261_s16), 15 }
   0xf   : > { %s4261_s29 = smul.u32 192, %s4381_s26  ;;  %s239_s25 = scalar_lea.vmem %s5013_s4, %s4381_s26 }
  0x11   : > { %s4401_s11 = scalar_lea.vmem %s5009_s0, %s4261_s29  ;;  %s242_s29 = scalar_lea.vmem %s5014_s5, %s4381_s26 }
  0x12   : > { %v260_v6 = vld [vmem:[%s4401_s11 + $0x1] sm:$0xff]  ;;  %v4405_v7 = vld [vmem:[%s4401_s11 + $0x11] sm:$0xff] }
  0x13   : > { %v4408_v8 = vld [vmem:[%s4401_s11 + $0x22] sm:$0xff]  ;;  %v268_v9 = vpack.c.bf16 %v4405_v7, %v260_v6  ;;  %v3392_v10 = vld [vmem:[%s4401_s11 + $0x32] sm:$0xff] }
  0x14   : > { %v4414_v11 = vld [vmem:[%s4401_s11 + $0x21] sm:$0xff]  ;;  %v4417_v12 = vld [vmem:[%s4401_s11 + $0x31] sm:$0xff]  ;;  %v4423_v14 = vpack.c.bf16 %v3392_v10, %v4408_v8 }
  0x15   : > { %v269_v15 = vpack.c.bf16 %v4417_v12, %v4414_v11  ;;  %v3393_v16 = vld [vmem:[%s4401_s11 + $0x42] sm:$0xff]  ;;  %v4429_v17 = vld [vmem:[%s4401_s11 + $0x52] sm:$0xff]  ;;  %v916_v19 = vpack.c.bf16 %v4414_v11, %v4405_v7  ;;  %3769 = vmatprep.mubr.msk.bf16.mxu1 %vm288_vm0, %v268_v9 }
  0x16   : > { %v4432_v18 = vld [vmem:[%s4401_s11 + $0x41] sm:$0xff]  ;;  %v4438_v20 = vpack.c.bf16 %v4429_v17, %v3393_v16  ;;  %v4441_v21 = vld [vmem:[%s4401_s11 + $0x51] sm:$0xff]  ;;  %v4449_v24 = vpack.c.bf16 %v3393_v16, %v3392_v10  ;;  %3913 = vmatprep.mubr.msk.bf16.mxu0 %vm288_vm0, %v4423_v14 }
  0x17   : > { %v4444_v22 = vld [vmem:[%s4401_s11 + $0x61] sm:$0xff]  ;;  %v4447_v23 = vld [vmem:[%s4401_s11 + $0x71] sm:$0xff]  ;;  %3770 = vmatmul.mubr.msk.bf16.vlgmr.msra.gmra.mrb[0].mxu1 %vm288_vm0, %v269_v15  ;;  %v4456_v25 = vpack.c.bf16 %v4441_v21, %v4432_v18 }
  0x18   : > { %3914 = vmatmul.mubr.msk.bf16.vlgmr.msra.gmra.mrb[0].mxu0 %vm288_vm0, %v4438_v20  ;;  %3778 = vmatpush3.bf16.msra.mxu1 %v4274_v4  ;;  %v4464_v27 = vld [vmem:[%s4401_s11 + $0x23] sm:$0xff]  ;;  %v3406_v28 = vld [vmem:[%s4401_s11 + $0x33] sm:$0xff]  ;;  %v4484_v35 = vpack.c.bf16 %v4447_v23, %v4444_v22 }
  0x19   : > { %v3407_v29 = vld [vmem:[%s4401_s11 + $0x43] sm:$0xff]  ;;  %3922 = vmatpush3.bf16.msra.mxu0 %v4275_v5  ;;  %3773 = vmatprep.mubr.msk.bf16.mxu1 %vm288_vm0, %v4456_v25  ;;  %v4471_v30 = vpack.c.bf16 %v3406_v28, %v4464_v27  ;;  %v4480_v34 = vld [vmem:[%s4401_s11 + $0x10] sm:$0xff] }
  0x1a   : > { %v4473_v31 = vpack.c.bf16 %v3407_v29, %v3406_v28  ;;  %3923 = vmatprep.subr.bf16.mxu0 %v4276_v13  ;;  %3779 = vmatprep.subr.bf16.mxu1 %v4277_v26  ;;  %v244_v33 = vld [vmem:[%s4401_s11] sm:$0xff]  ;;  %v3408_v36 = vld [vmem:[%s4401_s11 + $0x53] sm:$0xff] }
  0x1b   : > { %3925 = vmatprep.mubr.msk.bf16.mxu0 %vm288_vm0, %v4471_v30  ;;  %v252_v37 = vpack.c.bf16 %v4480_v34, %v244_v33  ;;  %v3409_v39 = vld [vmem:[%s4401_s11 + $0x63] sm:$0xff]  ;;  %v3410_v40 = vld [vmem:[%s4401_s11 + $0x73] sm:$0xff]  ;;  %v4505_v45 = vpack.c.bf16 %v3408_v36, %v3407_v29 }
  0x1c   : > { %3780 = vmatpush3.bf16.msra.mxu1 %v4277_v26  ;;  %v3411_v41 = vld [vmem:[%s4401_s11 + $0x83] sm:$0xff]  ;;  %v4496_v42 = vpack.c.bf16 %v3409_v39, %v3408_v36  ;;  %v4509_v46 = vld [vmem:[%s4401_s11 + $0x30] sm:$0xff]  ;;  %v4511_v47 = vpack.c.bf16 %v3410_v40, %v3409_v39 }
  0x1d   : > { %3924 = vmatpush3.bf16.msra.mxu0 %v4276_v13  ;;  %3789 = vmatprep.subr.bf16.mxu1 %v4279_v38  ;;  %v4498_v43 = vpack.c.bf16 %v3411_v41, %v3410_v40  ;;  %v4503_v44 = vld [vmem:[%s4401_s11 + $0x20] sm:$0xff]  ;;  %v4520_v50 = vld [vmem:[%s4401_s11 + $0x50] sm:$0xff] }
  0x1e   : > { %3933 = vmatprep.subr.bf16.mxu0 %v4278_v32  ;;  %v4517_v49 = vld [vmem:[%s4401_s11 + $0x40] sm:$0xff]  ;;  %v3420_v51 = vld [vmem:[%s4401_s11 + $0x34] sm:$0xff]  ;;  %v4526_v53 = vpack.c.bf16 %v4509_v46, %v4503_v44 }
  0x1f   : > { %3774 = vmatmul.mubr.msk.bf16.gmra.mrb[4].mxu1 %vm288_vm0, %v4484_v35  ;;  %v3421_v52 = vld [vmem:[%s4401_s11 + $0x44] sm:$0xff]  ;;  %v4529_v54 = vld [vmem:[%s4401_s11 + $0x93] sm:$0xff]  ;;  %v4540_v57 = vpack.c.bf16 %v4520_v50, %v4517_v49 }
  0x20   : > { %3781 = vmatprep.mubr.msk.bf16.mxu1 %vm288_vm0, %v252_v37  ;;  %v4534_v56 = vpack.c.bf16 %v3421_v52, %v3420_v51  ;;  %v4543_v58 = vld [vmem:[%s4401_s11 + $0x24] sm:$0xff]  ;;  %v4546_v59 = vld [vmem:[%s4401_s11 + $0x12] sm:$0xff]  ;;  %v1711_v10 = vpack.c.bf16 %v4529_v54, %v3411_v41 }
  0x21   : > { %v3422_v60 = vld [vmem:[%s4401_s11 + $0x54] sm:$0xff]  ;;  %v3423_v62 = vld [vmem:[%s4401_s11 + $0x64] sm:$0xff]  ;;  %v4574_v15 = vpack.c.bf16 %v3420_v51, %v4543_v58 }
  0x22   : > { %v3424_v0 = vld [vmem:[%s4401_s11 + $0x74] sm:$0xff]  ;;  %v3425_v2 = vld [vmem:[%s4401_s11 + $0x84] sm:$0xff]  ;;  %v4559_v4 = vpack.c.bf16 %v3423_v62, %v3422_v60 }
  0x23   : > { %v250_v5 = vld [vmem:[%s4401_s11 + $0x60] sm:$0xff]  ;;  %v4565_v6 = vld [vmem:[%s4401_s11 + $0x70] sm:$0xff]  ;;  %v4567_v9 = vpack.c.bf16 %v3425_v2, %v3424_v0  ;;  %v4606_v40 = vpack.c.bf16 %v3424_v0, %v3423_v62  ;;  %v4284_v41 = vld [vmem:[%s5010_s1 + $0xf8] sm:$0xff]  }
  0x24   : > { %3926 = vmatmul.mubr.msk.bf16.vlgmr.msra.gmra.mrb[0].mxu0 %vm288_vm0, %v4505_v45  ;;  %v455_v13 = vld [vmem:[%s4401_s11 + $0x2] sm:$0xff]  ;;  %v4283_v16 = vld [vmem:[%s5010_s1 + $0x30] sm:$0xff]   ;;  %v4583_v28 = vpack.c.bf16 %v4565_v6, %v250_v5  ;;  %v4285_v62 = vld [vmem:[%s5010_s1 + $0x38] sm:$0xff]  }
  0x25   : > { %3934 = vmatpush3.bf16.msra.mxu0 %v4278_v32  ;;  %3929 = vmatprep.mubr.msk.bf16.mxu0 %vm288_vm0, %v4511_v47  ;;  %v4580_v26 = vld [vmem:[%s4401_s11 + $0x13] sm:$0xff]  ;;  %v463_v32 = vpack.c.bf16 %v4546_v59, %v455_v13  ;;  %v3438_v33 = vld [vmem:[%s4401_s11 + $0x80] sm:$0xff] }
  0x26   : > { %3935 = vmatprep.subr.bf16.mxu0 %v4280_v48  ;;  %v4591_v36 = vld [vmem:[%s4401_s11 + $0x90] sm:$0xff]  ;;  %v3452_v51 = vld [vmem:[%s4401_s11 + $0x81] sm:$0xff] }
  0x27   : > { %3782 = vmatmul.mubr.msk.bf16.vlgmr.msra.gmra.mrb[0].mxu1 %vm288_vm0, %v4526_v53  ;;  %v4596_v37 = vpack.c.bf16 %v4591_v36, %v3438_v33  ;;  %v4604_v39 = vld [vmem:[%s4401_s11 + $0x14] sm:$0xff]  ;;  %v4631_v0 = vld [vmem:[%s4401_s11 + $0x62] sm:$0xff] }
  0x28   : > { %3790 = vmatpush3.bf16.msra.mxu1 %v4279_v38  ;;  %3785 = vmatprep.mubr.msk.bf16.mxu1 %vm288_vm0, %v4540_v57  ;;  %v4600_v38 = vpack.c.bf16 %v3422_v60, %v3421_v52  ;;  %v4623_v60 = vld [vmem:[%s4401_s11 + $0x94] sm:$0xff]  ;;  %v4286_v13 = vld [vmem:[%s5010_s1 + $0x100] sm:$0xff]  }
  0x29   : > { %3936 = vmatpush3.bf16.msra.mxu0 %v4280_v48  ;;  %3791 = vmatprep.subr.bf16.mxu1 %v4281_v55  ;;  %v4648_v48 = vpack.c.bf16 %v4623_v60, %v3425_v2  ;;  %v568_v29 = vld [vmem:[%s4401_s11 + $0x3] sm:$0xff] }
  0x2a   : > { %3945 = vmatprep.subr.bf16.mxu0 %v4282_v61  ;;  %v4287_v2 = vld [vmem:[%s5010_s1 + $0x40] sm:$0xff]  }
  0x2b   : > { %v4302_v7 = vld [vmem:[%s5010_s1 + $0x140] sm:$0xff]  }
  0x2c   : > { %3930 = vmatmul.mubr.msk.bf16.gmra.mrb[4].mxu0 %vm288_vm0, %v1711_v10  ;;  %3792 = vmatpush3.bf16.msra.mxu1 %v4281_v55  ;;  %v4615_v55 = vld [vmem:[%s4401_s11 + $0x91] sm:$0xff] }
  0x2d   : > { %3937 = vmatprep.mubr.msk.bf16.mxu0 %vm288_vm0, %v4574_v15  ;;  %3801 = vmatprep.subr.bf16.mxu1 %v4283_v16  ;;  %v4618_v52 = vpack.c.bf16 %v4615_v55, %v3452_v51  ;;  %v4634_v10 = vld [vmem:[%s4401_s11 + $0x72] sm:$0xff] }
  0x2f   : > { %3786 = vmatmul.mubr.msk.bf16.gmra.mrb[4].mxu1 %vm288_vm0, %v4583_v28 }
  0x30   : > { %3793 = vmatprep.mubr.msk.bf16.mxu1 %vm288_vm0, %v463_v32  ;;  %v4645_v32 = vld [vmem:[%s4401_s11 + $0x92] sm:$0xff] }
  0x34   : > { %3938 = vmatmul.mubr.msk.bf16.vlgmr.msra.gmra.mrb[0].mxu0 %vm288_vm0, %v4600_v38 }
  0x35   : > { %3946 = vmatpush3.bf16.msra.mxu0 %v4282_v61  ;;  %3941 = vmatprep.mubr.msk.bf16.mxu0 %vm288_vm0, %v4606_v40  ;;  %v4642_v61 = vld [vmem:[%s4401_s11 + $0x82] sm:$0xff] }
  0x36   : > { %3947 = vmatprep.subr.bf16.mxu0 %v4284_v41  ;;  %v4655_v63 = vpack.c.bf16 %v4645_v32, %v4642_v61 }
  0x37   : > { %3794 = vmatmul.mubr.msk.bf16.vlgmr.msra.gmra.mrb[0].mxu1 %vm288_vm0, %v4423_v14  ;;  %v4659_v14 = vpack.c.bf16 %v4517_v49, %v4509_v46  ;;  %v4676_v46 = vpack.c.bf16 %v250_v5, %v4520_v50  ;;  %v4680_v49 = vpack.c.bf16 %v3438_v33, %v4565_v6  ;;  %v4289_v50 = vld [vmem:[%s5010_s1 + $0x48] sm:$0xff]   ;;  %v4290_v5 = vld [vmem:[%s5010_s1 + $0x110] sm:$0xff]  }
  0x38   : > { %3802 = vmatpush3.bf16.msra.mxu1 %v4283_v16  ;;  %3797 = vmatprep.mubr.msk.bf16.mxu1 %vm288_vm0, %v4438_v20  ;;  %v4666_v16 = vpack.c.bf16 %v4634_v10, %v4631_v0  ;;  %v681_v33 = vld [vmem:[%s4401_s11 + $0x4] sm:$0xff] }
  0x39   : > { %3948 = vmatpush3.bf16.msra.mxu0 %v4284_v41  ;;  %3803 = vmatprep.subr.bf16.mxu1 %v4285_v62  ;;  %v576_v41 = vpack.c.bf16 %v4580_v26, %v568_v29  ;;  %v4288_v29 = vld [vmem:[%s5010_s1 + $0x108] sm:$0xff]  }
  0x3a   : > { %3957 = vmatprep.subr.bf16.mxu0 %v4286_v13 }
  0x3c   : > { %3942 = vmatmul.mubr.msk.bf16.gmra.mrb[4].mxu0 %vm288_vm0, %v4648_v48  ;;  %3804 = vmatpush3.bf16.msra.mxu1 %v4285_v62  ;;  %v4688_v62 = vld [vmem:[%s4401_s11 + $0xa0] sm:$0xff] }
  0x3d   : > { %3949 = vmatprep.mubr.msk.bf16.mxu0 %vm288_vm0, %v4659_v14  ;;  %3813 = vmatprep.subr.bf16.mxu1 %v4287_v2  ;;  %v1938_v6 = vpack.c.bf16 %v4688_v62, %v4591_v36  ;;  %v4731_v36 = vld [vmem:[%s4401_s11 + $0xa1] sm:$0xff] }
  0x3f   : > { %3798 = vmatmul.mubr.msk.bf16.gmra.mrb[4].mxu1 %vm288_vm0, %v4666_v16 }
  0x40   : > { %3805 = vmatprep.mubr.msk.bf16.mxu1 %vm288_vm0, %v576_v41  ;;  %v4291_v41 = vld [vmem:[%s5010_s1 + $0x50] sm:$0xff]  }
  0x44   : > { %3950 = vmatmul.mubr.msk.bf16.vlgmr.msra.gmra.mrb[0].mxu0 %vm288_vm0, %v4676_v46 }
  0x45   : > { %3958 = vmatpush3.bf16.msra.mxu0 %v4286_v13  ;;  %3953 = vmatprep.mubr.msk.bf16.mxu0 %vm288_vm0, %v4680_v49  ;;  %v4707_v13 = vpack.c.bf16 %v4432_v18, %v4417_v12  ;;  %v2049_v12 = vpack.c.bf16 %v4444_v22, %v4441_v21  ;;  %v4722_v18 = vpack.c.bf16 %v3452_v51, %v4447_v23  ;;  %v4293_v21 = vld [vmem:[%s5010_s1 + $0x58] sm:$0xff]   ;;  %v4294_v22 = vld [vmem:[%s5010_s1 + $0x120] sm:$0xff]  }
  0x46   : > { %3959 = vmatprep.subr.bf16.mxu0 %v4288_v29  ;;  %v2051_v23 = vpack.c.bf16 %v4731_v36, %v4615_v55  ;;  %v4295_v51 = vld [vmem:[%s5010_s1 + $0x60] sm:$0xff]   ;;  %v2162_v55 = vpack.c.bf16 %v4631_v0, %v4429_v17  ;;  %v4297_v17 = vld [vmem:[%s5010_s1 + $0x68] sm:$0xff]   ;;  %v4298_v0 = vld [vmem:[%s5010_s1 + $0x130] sm:$0xff]  }
  0x47   : > { %3806 = vmatmul.mubr.msk.bf16.vlgmr.msra.gmra.mrb[0].mxu1 %vm288_vm0, %v4471_v30  ;;  %v689_v30 = vpack.c.bf16 %v4604_v39, %v681_v33  ;;  %v4309_v33 = vld [vmem:[%s5010_s1 + $0x98] sm:$0xff]  }
  0x48   : > { %3814 = vmatpush3.bf16.msra.mxu1 %v4287_v2  ;;  %3809 = vmatprep.mubr.msk.bf16.mxu1 %vm288_vm0, %v4505_v45  ;;  %v4292_v45 = vld [vmem:[%s5010_s1 + $0x118] sm:$0xff]   ;;  %v4760_v2 = vpack.c.bf16 %v4642_v61, %v4634_v10  ;;  %v4299_v61 = vld [vmem:[%s5010_s1 + $0x70] sm:$0xff]  }
  0x49   : > { %3960 = vmatpush3.bf16.msra.mxu0 %v4288_v29  ;;  %3815 = vmatprep.subr.bf16.mxu1 %v4289_v50  ;;  %v4836_v29 = vld [vmem:[%s4401_s11 + $0xa4] sm:$0xff] }
  0x4a   : > { %3969 = vmatprep.subr.bf16.mxu0 %v4290_v5 }
  0x4c   : > { %3954 = vmatmul.mubr.msk.bf16.gmra.mrb[4].mxu0 %vm288_vm0, %v1938_v6  ;;  %3816 = vmatpush3.bf16.msra.mxu1 %v4289_v50  ;;  %v4305_v50 = vld [vmem:[%s5010_s1 + $0x88] sm:$0xff]   ;;  %v3510_v6 = vld [vmem:[%s4401_s11 + $0xb0] sm:$0xff] }
  0x4d   : > { %3961 = vmatprep.mubr.msk.bf16.mxu0 %vm288_vm0, %v4707_v13  ;;  %3825 = vmatprep.subr.bf16.mxu1 %v4291_v41 }
  0x4f   : > { %3810 = vmatmul.mubr.msk.bf16.gmra.mrb[4].mxu1 %vm288_vm0, %v4511_v47 }
  0x50   : > { %3817 = vmatprep.mubr.msk.bf16.mxu1 %vm288_vm0, %v689_v30 }
  0x54   : > { %3962 = vmatmul.mubr.msk.bf16.vlgmr.msra.gmra.mrb[0].mxu0 %vm288_vm0, %v2049_v12 }
  0x55   : > { %3970 = vmatpush3.bf16.msra.mxu0 %v4290_v5  ;;  %3965 = vmatprep.mubr.msk.bf16.mxu0 %vm288_vm0, %v4722_v18  ;;  %v4307_v5 = vld [vmem:[%s5010_s1 + $0x90] sm:$0xff]  }
  0x56   : > { %3971 = vmatprep.subr.bf16.mxu0 %v4292_v45 }
  0x57   : > { %3818 = vmatmul.mubr.msk.bf16.vlgmr.msra.gmra.mrb[0].mxu1 %vm288_vm0, %v4574_v15  ;;  %v803_v15 = vpack.c.bf16 %v4503_v44, %v4480_v34  ;;  %v4296_v34 = vld [vmem:[%s5010_s1 + $0x128] sm:$0xff]  }
  0x58   : > { %3826 = vmatpush3.bf16.msra.mxu1 %v4291_v41  ;;  %3821 = vmatprep.mubr.msk.bf16.mxu1 %vm288_vm0, %v4600_v38  ;;  %v4769_v44 = vld [vmem:[%s4401_s11 + $0xa2] sm:$0xff] }
  0x59   : > { %3972 = vmatpush3.bf16.msra.mxu0 %v4292_v45  ;;  %3827 = vmatprep.subr.bf16.mxu1 %v4293_v21  ;;  %v2164_v10 = vpack.c.bf16 %v4769_v44, %v4645_v32  ;;  %v4300_v32 = vld [vmem:[%s5010_s1 + $0x138] sm:$0xff]  }
  0x5a   : > { %3981 = vmatprep.subr.bf16.mxu0 %v4294_v22  ;;  %v3550_v45 = vld [vmem:[%s4401_s11 + $0x93] sm:$0xff] }
  0x5c   : > { %3966 = vmatmul.mubr.msk.bf16.gmra.mrb[4].mxu0 %vm288_vm0, %v2051_v23  ;;  %3828 = vmatpush3.bf16.msra.mxu1 %v4293_v21  ;;  %v3380_v21 = vld [vmem:[%s4401_s11 + $0x51] sm:$0xff]  ;;  %v3381_v23 = vld [vmem:[%s4401_s11 + $0x61] sm:$0xff] }
  0x5d   : > { %3973 = vmatprep.mubr.msk.bf16.mxu0 %vm288_vm0, %v4449_v24  ;;  %3837 = vmatprep.subr.bf16.mxu1 %v4295_v51 }
  0x5f   : > { %3822 = vmatmul.mubr.msk.bf16.gmra.mrb[4].mxu1 %vm288_vm0, %v4606_v40 }
  0x60   : > { %3829 = vmatprep.mubr.msk.bf16.mxu1 %vm288_vm0, %v803_v15  ;;  %v4319_v15 = vld [vmem:[%s5010_s1 + $0x188] sm:$0xff]  }
  0x64   : > { %3974 = vmatmul.mubr.msk.bf16.vlgmr.msra.gmra.mrb[0].mxu0 %vm288_vm0, %v2162_v55 }
  0x65   : > { %3982 = vmatpush3.bf16.msra.mxu0 %v4294_v22  ;;  %3977 = vmatprep.mubr.msk.bf16.mxu0 %vm288_vm0, %v4760_v2 }
  0x66   : > { %3983 = vmatprep.subr.bf16.mxu0 %v4296_v34 }
  0x67   : > { %3830 = vmatmul.mubr.msk.bf16.vlgmr.msra.gmra.mrb[0].mxu1 %vm288_vm0, %v4659_v14  ;;  %v4803_v14 = vld [vmem:[%s4401_s11 + $0xa3] sm:$0xff] }
  0x68   : > { %3838 = vmatpush3.bf16.msra.mxu1 %v4295_v51  ;;  %3833 = vmatprep.mubr.msk.bf16.mxu1 %vm288_vm0, %v4676_v46  ;;  %v4301_v46 = vld [vmem:[%s5010_s1 + $0x78] sm:$0xff]   ;;  %v2277_v11 = vpack.c.bf16 %v4803_v14, %v4529_v54  ;;  %v5015_v54 = vpack.c.bf16 %v4408_v8, %v4546_v59  ;;  %v4306_v8 = vld [vmem:[%s5010_s1 + $0x150] sm:$0xff]   ;;  %v2390_v59 = vpack.c.bf16 %v4836_v29, %v4623_v60 }
  0x69   : > { %3984 = vmatpush3.bf16.msra.mxu0 %v4296_v34  ;;  %3839 = vmatprep.subr.bf16.mxu1 %v4297_v17  ;;  %v4308_v60 = vld [vmem:[%s5010_s1 + $0x158] sm:$0xff]  }
  0x6a   : > { %3993 = vmatprep.subr.bf16.mxu0 %v4298_v0  ;;  %v3382_v51 = vld [vmem:[%s4401_s11 + $0x71] sm:$0xff] }
  0x6c   : > { %3978 = vmatmul.mubr.msk.bf16.gmra.mrb[4].mxu0 %vm288_vm0, %v2164_v10  ;;  %3840 = vmatpush3.bf16.msra.mxu1 %v4297_v17 }
  0x6d   : > { %3985 = vmatprep.mubr.msk.bf16.mxu0 %vm288_vm0, %v4473_v31  ;;  %3849 = vmatprep.subr.bf16.mxu1 %v4299_v61 }
  0x6f   : > { %3834 = vmatmul.mubr.msk.bf16.gmra.mrb[4].mxu1 %vm288_vm0, %v4680_v49  ;;  %v4304_v49 = vld [vmem:[%s5010_s1 + $0x148] sm:$0xff]  }
  0x70   : > { %3841 = vmatprep.mubr.msk.bf16.mxu1 %vm288_vm0, %v916_v19  ;;  %v4303_v19 = vld [vmem:[%s5010_s1 + $0x80] sm:$0xff]  }
  0x74   : > { %3986 = vmatmul.mubr.msk.bf16.vlgmr.msra.gmra.mrb[0].mxu0 %vm288_vm0, %v4496_v42 }
  0x75   : > { %3994 = vmatpush3.bf16.msra.mxu0 %v4298_v0  ;;  %3989 = vmatprep.mubr.msk.bf16.mxu0 %vm288_vm0, %v4498_v43 }
  0x76   : > { %3995 = vmatprep.subr.bf16.mxu0 %v4300_v32 }
  0x77   : > { %3842 = vmatmul.mubr.msk.bf16.vlgmr.msra.gmra.mrb[0].mxu1 %vm288_vm0, %v4707_v13  ;;  %v4311_v13 = vld [vmem:[%s5010_s1 + $0xa0] sm:$0xff]  }
  0x78   : > { %3850 = vmatpush3.bf16.msra.mxu1 %v4299_v61  ;;  %3845 = vmatprep.mubr.msk.bf16.mxu1 %vm288_vm0, %v2049_v12  ;;  %v3377_v12 = vld [vmem:[%s4401_s11 + $0x21] sm:$0xff] }
  0x79   : > { %3996 = vmatpush3.bf16.msra.mxu0 %v4300_v32  ;;  %3851 = vmatprep.subr.bf16.mxu1 %v4301_v46 }
  0x7a   : > { %4005 = vmatprep.subr.bf16.mxu0 %v4302_v7 }
  0x7c   : > { %3990 = vmatmul.mubr.msk.bf16.gmra.mrb[4].mxu0 %vm288_vm0, %v2277_v11  ;;  %3852 = vmatpush3.bf16.msra.mxu1 %v4301_v46 }
  0x7d   : > { %3997 = vmatprep.mubr.msk.bf16.mxu0 %vm288_vm0, %v4534_v56  ;;  %3861 = vmatprep.subr.bf16.mxu1 %v4303_v19 }
  0x7f   : > { %3846 = vmatmul.mubr.msk.bf16.gmra.mrb[4].mxu1 %vm288_vm0, %v4722_v18  ;;  %v3378_v18 = vld [vmem:[%s4401_s11 + $0x31] sm:$0xff] }
  0x80   : > { %3853 = vmatprep.mubr.msk.bf16.mxu1 %vm288_vm0, %v5015_v54 }
  0x84   : > { %3998 = vmatmul.mubr.msk.bf16.vlgmr.msra.gmra.mrb[0].mxu0 %vm288_vm0, %v4559_v4 }
  0x85   : > { %4006 = vmatpush3.bf16.msra.mxu0 %v4302_v7  ;;  %4001 = vmatprep.mubr.msk.bf16.mxu0 %vm288_vm0, %v4567_v9 }
  0x86   : > { %4007 = vmatprep.subr.bf16.mxu0 %v4304_v49 }
  0x87   : > { %3854 = vmatmul.mubr.msk.bf16.vlgmr.msra.gmra.mrb[0].mxu1 %vm288_vm0, %v4449_v24  ;;  %v5016_v24 = vpack.c.bf16 %v4464_v27, %v4580_v26  ;;  %v4310_v27 = vld [vmem:[%s5010_s1 + $0x160] sm:$0xff]   ;;  %v2504_v26 = vpack.c.bf16 %v3510_v6, %v4688_v62 }
  0x88   : > { %3862 = vmatpush3.bf16.msra.mxu1 %v4303_v19  ;;  %3857 = vmatprep.mubr.msk.bf16.mxu1 %vm288_vm0, %v2162_v55  ;;  %v4318_v62 = vld [vmem:[%s5010_s1 + $0x180] sm:$0xff]  }
  0x89   : > { %4008 = vmatpush3.bf16.msra.mxu0 %v4304_v49  ;;  %3863 = vmatprep.subr.bf16.mxu1 %v4305_v50 }
  0x8a   : > { %4017 = vmatprep.subr.bf16.mxu0 %v4306_v8 }
  0x8c   : > { %4002 = vmatmul.mubr.msk.bf16.gmra.mrb[4].mxu0 %vm288_vm0, %v2390_v59  ;;  %3864 = vmatpush3.bf16.msra.mxu1 %v4305_v50 }
  0x8d   : > { %4009 = vmatprep.mubr.msk.bf16.mxu0 %vm288_vm0, %v4540_v57  ;;  %3873 = vmatprep.subr.bf16.mxu1 %v4307_v5 }
  0x8f   : > { %3858 = vmatmul.mubr.msk.bf16.gmra.mrb[4].mxu1 %vm288_vm0, %v4760_v2  ;;  %v1484_v2 = vpack.c.bf16 %v3382_v51, %v3381_v23 }
  0x90   : > { %3865 = vmatprep.mubr.msk.bf16.mxu1 %vm288_vm0, %v5016_v24 }
  0x94   : > { %4010 = vmatmul.mubr.msk.bf16.vlgmr.msra.gmra.mrb[0].mxu0 %vm288_vm0, %v4583_v28 }
  0x95   : > { %4018 = vmatpush3.bf16.msra.mxu0 %v4306_v8  ;;  %4013 = vmatprep.mubr.msk.bf16.mxu0 %vm288_vm0, %v4596_v37 }
  0x96   : > { %4019 = vmatprep.subr.bf16.mxu0 %v4308_v60 }
  0x97   : > { %3866 = vmatmul.mubr.msk.bf16.vlgmr.msra.gmra.mrb[0].mxu1 %vm288_vm0, %v4473_v31  ;;  %v5017_v31 = vpack.c.bf16 %v4543_v58, %v4604_v39  ;;  %v4314_v58 = vld [vmem:[%s5010_s1 + $0x170] sm:$0xff]  }
  0x98   : > { %3874 = vmatpush3.bf16.msra.mxu1 %v4307_v5  ;;  %3869 = vmatprep.mubr.msk.bf16.mxu1 %vm288_vm0, %v4496_v42  ;;  %v4312_v42 = vld [vmem:[%s5010_s1 + $0x168] sm:$0xff]   ;;  %v4315_v39 = vld [vmem:[%s5010_s1 + $0xb0] sm:$0xff]  }
  0x99   : > { %4020 = vmatpush3.bf16.msra.mxu0 %v4308_v60  ;;  %3875 = vmatprep.subr.bf16.mxu1 %v4309_v33 }
  0x9a   : > { %4029 = vmatprep.subr.bf16.mxu0 %v4310_v27 }
  0x9c   : > { %4014 = vmatmul.mubr.msk.bf16.gmra.mrb[4].mxu0 %vm288_vm0, %v2504_v26  ;;  %3876 = vmatpush3.bf16.msra.mxu1 %v4309_v33 }
  0x9d   : > { %4021 = vmatprep.mubr.msk.bf16.mxu0 %vm288_vm0, %v4456_v25  ;;  %3885 = vmatprep.subr.bf16.mxu1 %v4311_v13  ;;  %v3524_v25 = vld [vmem:[%s4401_s11 + $0xb1] sm:$0xff] }
  0x9f   : > { %3870 = vmatmul.mubr.msk.bf16.gmra.mrb[4].mxu1 %vm288_vm0, %v4498_v43  ;;  %v4313_v43 = vld [vmem:[%s5010_s1 + $0xa8] sm:$0xff]  }
  0xa0   : > { %3877 = vmatprep.mubr.msk.bf16.mxu1 %vm288_vm0, %v5017_v31 }
  0xa4   : > { %4022 = vmatmul.mubr.msk.bf16.vlgmr.msra.gmra.mrb[0].mxu0 %vm288_vm0, %v4484_v35  ;;  %v2617_v35 = vpack.c.bf16 %v3524_v25, %v4731_v36  ;;  %v3379_v36 = vld [vmem:[%s4401_s11 + $0x41] sm:$0xff] }
  0xa5   : > { %4030 = vmatpush3.bf16.msra.mxu0 %v4310_v27  ;;  %4025 = vmatprep.mubr.msk.bf16.mxu0 %vm288_vm0, %v4618_v52  ;;  %v1483_v55 = vpack.c.bf16 %v3380_v21, %v3379_v36 }
  0xa6   : > { %4031 = vmatprep.subr.bf16.mxu0 %v4312_v42 }
  0xa7   : > { %3878 = vmatmul.mubr.msk.bf16.vlgmr.msra.gmra.mrb[0].mxu1 %vm288_vm0, %v4534_v56  ;;  %v4316_v56 = vld [vmem:[%s5010_s1 + $0x178] sm:$0xff]  }
  0xa8   : > { %3886 = vmatpush3.bf16.msra.mxu1 %v4311_v13  ;;  %3881 = vmatprep.mubr.msk.bf16.mxu1 %vm288_vm0, %v4559_v4  ;;  %v4317_v4 = vld [vmem:[%s5010_s1 + $0xb8] sm:$0xff]  }
  0xa9   : > { %4032 = vmatpush3.bf16.msra.mxu0 %v4312_v42  ;;  %3887 = vmatprep.subr.bf16.mxu1 %v4313_v43 }
  0xaa   : > { %4041 = vmatprep.subr.bf16.mxu0 %v4314_v58 }
  0xac   : > { %4026 = vmatmul.mubr.msk.bf16.gmra.mrb[4].mxu0 %vm288_vm0, %v2617_v35  ;;  %3888 = vmatpush3.bf16.msra.mxu1 %v4313_v43 }
  0xad   : > { %4033 = vmatprep.mubr.msk.bf16.mxu0 %vm288_vm0, %v4438_v20  ;;  %3897 = vmatprep.subr.bf16.mxu1 %v4315_v39  ;;  %v3538_v20 = vld [vmem:[%s4401_s11 + $0xb2] sm:$0xff] }
  0xae   : > { %v2730_v41 = vpack.c.bf16 %v3538_v20, %v4769_v44 }
  0xaf   : > { %3882 = vmatmul.mubr.msk.bf16.gmra.mrb[4].mxu1 %vm288_vm0, %v4567_v9  ;;  %v3546_v9 = vld [vmem:[%s4401_s11 + $0x53] sm:$0xff] }
  0xb0   : > { %3889 = vmatprep.mubr.msk.bf16.mxu1 %vm288_vm0, %v4526_v53  ;;  %v3545_v53 = vld [vmem:[%s4401_s11 + $0x43] sm:$0xff] }
  0xb1   : > { %v2840_v30 = vpack.c.bf16 %v3546_v9, %v3545_v53 }
  0xb4   : > { %4034 = vmatmul.mubr.msk.bf16.vlgmr.msra.gmra.mrb[0].mxu0 %vm288_vm0, %v4666_v16 }
  0xb5   : > { %4042 = vmatpush3.bf16.msra.mxu0 %v4314_v58  ;;  %4037 = vmatprep.mubr.msk.bf16.mxu0 %vm288_vm0, %v4655_v63 }
  0xb6   : > { %4043 = vmatprep.subr.bf16.mxu0 %v4316_v56 }
  0xb7   : > { %3890 = vmatmul.mubr.msk.bf16.vlgmr.msra.gmra.mrb[0].mxu1 %vm288_vm0, %v4540_v57  ;;  %v1482_v57 = vpack.c.bf16 %v3378_v18, %v3377_v12 }
  0xb8   : > { %3898 = vmatpush3.bf16.msra.mxu1 %v4315_v39  ;;  %3893 = vmatprep.mubr.msk.bf16.mxu1 %vm288_vm0, %v4583_v28  ;;  %v3549_v28 = vld [vmem:[%s4401_s11 + $0x83] sm:$0xff] }
  0xb9   : > { %4044 = vmatpush3.bf16.msra.mxu0 %v4316_v56  ;;  %3899 = vmatprep.subr.bf16.mxu1 %v4317_v4  ;;  %v2842_v22 = vpack.c.bf16 %v3550_v45, %v3549_v28 }
  0xba   : > { %4053 = vmatprep.subr.bf16.mxu0 %v4318_v62 }
  0xbc   : > { %4038 = vmatmul.mubr.msk.bf16.gmra.mrb[4].mxu0 %vm288_vm0, %v2730_v41  ;;  %3900 = vmatpush3.bf16.msra.mxu1 %v4317_v4 }
  0xbd   : > { %4045 = vmatprep.mubr.msk.bf16.mxu0 %vm288_vm0, %v2840_v30  ;;  %4065 = vmatprep.subr.bf16.mxu1 %v4375_v1 }
  0xbf   : > { %3894 = vmatmul.mubr.msk.bf16.gmra.mrb[4].mxu1 %vm288_vm0, %v4596_v37  ;;  %v3552_v37 = vld [vmem:[%s4401_s11 + $0xb3] sm:$0xff] }
  0xc0   : > { %3901 = vmatprep.mubr.msk.bf16.mxu1 %vm288_vm0, %v1482_v57  ;;  %v2843_v34 = vpack.c.bf16 %v3552_v37, %v4803_v14 }
  0xc4   : > { %4046 = vmatmul.mubr.msk.bf16.vlgmr.msra.gmra.mrb[0].mxu0 %vm288_vm0, %v4511_v47 }
  0xc5   : > { %4054 = vmatpush3.bf16.msra.mxu0 %v4318_v62  ;;  %4049 = vmatprep.mubr.msk.bf16.mxu0 %vm288_vm0, %v2842_v22 }
  0xc6   : > { %4055 = vmatprep.subr.bf16.mxu0 %v4319_v15 }
  0xc7   : > { %3902 = vmatmul.mubr.msk.bf16.vlgmr.msra.gmra.mrb[0].mxu1 %vm288_vm0, %v1483_v55 }
  0xc8   : > { %4067 = vmatpush3.bf16.msra.mxu1 %v4375_v1  ;;  %3905 = vmatprep.mubr.msk.bf16.mxu1 %vm288_vm0, %v1484_v2  ;;  %v3566_v1 = vld [vmem:[%s4401_s11 + $0xb4] sm:$0xff]  ;;  %s3262_s11 = sshll.u32 %s5019_s16, 2 }
  0xc9   : > { %4056 = vmatpush3.bf16.msra.mxu0 %v4319_v15  ;;  %4066 = vmatprep.subr.bf16.mxu1 %v4387_v3  ;;  %v2956_v47 = vpack.c.bf16 %v3566_v1, %v4836_v29  ;;  %s4992_s22 = scalar_lea.vmem %s5012_s3, %s3262_s11 }
  0xcc   : > { %4050 = vmatmul.mubr.msk.bf16.gmra.mrb[4].mxu0 %vm288_vm0, %v2843_v34  ;;  %4068 = vmatpush3.bf16.msra.mxu1 %v4387_v3 }
  0xcd   : > { %4057 = vmatprep.mubr.msk.bf16.mxu0 %vm288_vm0, %v4600_v38 }
  0xcf   : > { %3906 = vmatmul.mubr.msk.bf16.gmra.mrb[4].mxu1 %vm288_vm0, %v4618_v52 }
  0xd0   : > { %3917 = vmatprep.mubr.msk.bf16.mxu1 %vm288_vm0, %v4666_v16 }
  0xd4   : > { %4058 = vmatmul.mubr.msk.bf16.vlgmr.msra.gmra.mrb[0].mxu0 %vm288_vm0, %v4606_v40 }
  0xd5   : > { %4061 = vmatprep.mubr.msk.bf16.mxu0 %vm288_vm0, %v4648_v48  ;;  %v3573_v48 = vld [vmem:[%s5011_s2] ss:$0 sm:$0xff] }
  0xdb   : > { %3918 = vmatmul.mubr.msk.bf16.vlgmr.msra.gmra.mrb[4].mxu1 %vm288_vm0, %v4655_v63 }
  0xdc   : > { %4062 = vmatmul.mubr.msk.bf16.gmra.mrb[4].mxu0 %vm288_vm0, %v2956_v47 }
 0x19a   : > { %v3903_v3 = vpop.f32.mrb[0].mxu1 }
 0x19b   : > { %v1548_v38 = vpop.f32.mrb[1].mxu1 }
 0x19c   : > { %v3904_v52 = vpop.f32.mrb[2].mxu1 }
 0x19d   : > { %v1551_v44 = vpop.f32.mrb[3].mxu1 }
 0x1a7   : > { %v4059_v16 = vpop.f32.mrb[0].mxu0 }
 0x1a8   : > { %v4069_v40 = vadd.f32 %v4059_v16, %v3903_v3  ;;  %v3019_v17 = vpop.f32.mrb[1].mxu0 }
 0x1a9   : > { %v4070_v0 = vadd.f32 %v3019_v17, %v1548_v38  ;;  %v4060_v10 = vpop.f32.mrb[2].mxu0 }
 0x1aa   : > { %v4071_v63 = vadd.f32 %v4060_v10, %v3904_v52  ;;  %v3022_v61 = vpop.f32.mrb[3].mxu0  ;;  %v3067_v46 = vadd.f32 %v4069_v40, %v3573_v48 }
 0x1ab   : > { %v3065_v32 = vadd.f32 %v4070_v0, %v3573_v48  ;;  %v4072_v14 = vadd.f32 %v3022_v61, %v1551_v44 }
 0x1ac   : > { %v3068_v7 = vadd.f32 %v4071_v63, %v3573_v48  ;;  %v3129_v33 = vmul.f32 %v3067_v46, %v3067_v46 }
 0x1ad   : > { %v3066_v11 = vadd.f32 %v4072_v14, %v3573_v48  ;;  %v3127_v49 = vmul.f32 %v3065_v32, %v3065_v32 }
 0x1ae   : > { %v3600_v19 = vpack.c.bf16 %v3068_v7, %v3067_v46  ;;  %v3919_v54 = vpop.f32.mrb[4].mxu1  ;;  %v3130_v25 = vmul.f32 %v3068_v7, %v3068_v7 }
 0x1af   : > { %v3595_v29 = vpack.c.bf16 %v3066_v11, %v3065_v32  ;;  %v3113_v50 = vadd.f32 %v3066_v11, %v3065_v32  ;;  %v3128_v8 = vmul.f32 %v3066_v11, %v3066_v11  ;;  %v4063_v59 = vpop.f32.mrb[4].mxu0  ;;  %v1677_v5 = vpop.f32.mrb[5].mxu1 }
 0x1b0   : > { %3612 = vst [vmem:[%s4992_s22 + $0x8] sm:$0xff] %v3600_v19   ;;  %v4073_v24 = vadd.f32 %v4063_v59, %v3919_v54  ;;  %v3035_v60 = vpop.f32.mrb[5].mxu0  ;;  %v3920_v6 = vpop.f32.mrb[6].mxu1 }
 0x1b1   : > { %3596 = vst [vmem:[%s4992_s22] sm:$0xff] %v3595_v29   ;;  %v3114_v27 = vadd.f32 %v3113_v50, %v3067_v46  ;;  %v3135_v26 = vadd.f32 %v3128_v8, %v3127_v49  ;;  %v4074_v13 = vadd.f32 %v3035_v60, %v1677_v5  ;;  %v4064_v31 = vpop.f32.mrb[6].mxu0  ;;  %v1680_v42 = vpop.f32.mrb[7].mxu1 }
 0x1b2   : > { %v4075_v43 = vadd.f32 %v4064_v31, %v3920_v6  ;;  %v3038_v58 = vpop.f32.mrb[7].mxu0  ;;  %v3071_v4 = vadd.f32 %v4073_v24, %v3573_v48 }
 0x1b3   : > { %v3136_v35 = vadd.f32 %v3135_v26, %v3129_v33  ;;  %v3069_v39 = vadd.f32 %v4074_v13, %v3573_v48  ;;  %v3115_v56 = vadd.f32 %v3114_v27, %v3068_v7  ;;  %v4076_v20 = vadd.f32 %v3038_v58, %v1680_v42 }
 0x1b4   : > { %v3072_v53 = vadd.f32 %v4075_v43, %v3573_v48  ;;  %v3133_v36 = vmul.f32 %v3071_v4, %v3071_v4 }
 0x1b5   : > { %v3116_v9 = vadd.f32 %v3115_v56, %v3069_v39  ;;  %v3131_v62 = vmul.f32 %v3069_v39, %v3069_v39  ;;  %v3137_v41 = vadd.f32 %v3136_v35, %v3130_v25  ;;  %v3070_v30 = vadd.f32 %v4076_v20, %v3573_v48 }
 0x1b6   : > { %v3610_v12 = vpack.c.bf16 %v3072_v53, %v3071_v4  ;;  %v3134_v23 = vmul.f32 %v3072_v53, %v3072_v53 }
 0x1b7   : > { %v3138_v18 = vadd.f32 %v3137_v41, %v3131_v62  ;;  %v3605_v57 = vpack.c.bf16 %v3070_v30, %v3069_v39  ;;  %v3117_v28 = vadd.f32 %v3116_v9, %v3070_v30  ;;  %v3132_v45 = vmul.f32 %v3070_v30, %v3070_v30 }
 0x1b8   : > { %3614 = vst [vmem:[%s4992_s22 + $0x18] sm:$0xff] %v3610_v12  }
 0x1b9   : > { %3613 = vst [vmem:[%s4992_s22 + $0x10] sm:$0xff] %v3605_v57   ;;  %v3118_v21 = vadd.f32 %v3117_v28, %v3071_v4  ;;  %v3139_v22 = vadd.f32 %v3138_v18, %v3132_v45 }
 0x1bb   : > { %v3119_v51 = vadd.f32 %v3118_v21, %v3072_v53  ;;  %v3140_v15 = vadd.f32 %v3139_v22, %v3133_v36 }
 0x1bd   : > { %v3120_v55 = vrot.slane %v3119_v51, 4  ;;  %v3141_v2 = vadd.f32 %v3140_v15, %v3134_v23 }
 0x1bf   : > { %v3121_v37 = vadd.f32 %v3120_v55, %v3119_v51  ;;  %v3142_v34 = vrot.slane %v3141_v2, 4 }
 0x1c1   : > { %v3122_v1 = vrot.slane %v3121_v37, 2  ;;  %v3143_v47 = vadd.f32 %v3142_v34, %v3141_v2 }
 0x1c3   : > { %v3123_v3 = vadd.f32 %v3122_v1, %v3121_v37  ;;  %v3144_v38 = vrot.slane %v3143_v47, 2 }
 0x1c5   : > { %v3124_v52 = vrot.slane %v3123_v3, 1  ;;  %v3145_v44 = vadd.f32 %v3144_v38, %v3143_v47 }
 0x1c7   : > { %v3125_v16 = vadd.f32 %v3124_v52, %v3123_v3  ;;  %v3146_v40 = vrot.slane %v3145_v44, 1 }
 0x1c9   : > { %3126 = vst [vmem:[%s239_s25] sm:$0x1] %v3125_v16  ;;  %v3147_v48 = vadd.f32 %v3146_v40, %v3145_v44 }
 0x1cb   : > { %3148 = vst [vmem:[%s242_s29] sm:$0x1] %v3147_v48 }
 0x1cc PF: > { %s16_s18 = sadd.s32 1, %s4326_s18  }
 0x1cd   : > { %p13_p5 = scmp.ge.s32.totalorder %s16_s18, 4  }
 0x1cf   :  { %15 = sbr.rel (!%p13_p5) target bundleno = 1 (0x1), region = 90 }

</bundles_post_ra>
